<compile_context>
chip_gen: v6e
topology: v6e:2x2x1
jax: 0.10.0
libtpu: 0.0.40
codegen_flags: <defaults>
</compile_context>

<pallas_src>
import jax
import jax.numpy as jnp
from jax import lax
from jax.experimental import pallas as pl
from jax.experimental.pallas import tpu as pltpu


def inception_kernel(xa_ref, xlo_ref, xhi_ref, w_ref, b_ref, out_ref):
    # xa_ref : (1, TH, W+2, C)  main padded-input row tile (NHWC, padded rows h*TH ..)
    # xlo_ref: (1, 1,  W+2, C)  halo row (h+1)*TH     of the padded input
    # xhi_ref: (1, 1,  W+2, C)  halo row (h+1)*TH + 1 of the padded input
    # w_ref  : (9, C, OCp)      per-tap weights, BN scale folded; branch1 lives in
    #                           the centre tap, cols [0, O1); lane-padded to OCp
    # b_ref  : (1, OCp)         folded BN bias (f32), zero in the padded lanes
    # out_ref: (1, TH, W, OCp)  concat([branch1, branch3], channel), lane-dense
    TH, W, OCp = out_ref.shape[1], out_ref.shape[2], out_ref.shape[3]
    C = xa_ref.shape[3]

    # (TH+2, W+2, C) window for this row tile (one small VMEM copy).
    x = jnp.concatenate([xa_ref[0], xlo_ref[0], xhi_ref[0]], axis=0)

    # 9 accumulating MXU matmuls on shifted views (no 9C lane concat / patch buffer).
    # TODO(synk): generate the dx shifts with pltpu.roll (XLU slot) instead of
    # unaligned sublane slices if the slice-copy work ever becomes the bottleneck.
    acc = None
    for t in range(9):
        dy, dx = divmod(t, 3)
        xs = x[dy:dy + TH, dx:dx + W, :].reshape(TH * W, C)
        d = jnp.dot(xs, w_ref[t], preferred_element_type=jnp.float32)
        acc = d if acc is None else acc + d

    y = jnp.maximum(acc + b_ref[...], 0.0)                 # BN bias + ReLU in f32
    out_ref[...] = y.reshape(1, TH, W, OCp).astype(out_ref.dtype)   # single lane-dense store


def _round_up(v, m):
    return ((v + m - 1) // m) * m


def _pick_tile_rows(H, W, C, OCp, in_dtype, out_dtype, vmem_budget):
    """Largest row tile (divisor of H) whose lane/sublane-PADDED VMEM footprint
    (double-buffered pipeline blocks + in-kernel f32 intermediates) fits the
    per-generation budget."""
    in_item = jnp.dtype(in_dtype).itemsize
    out_item = jnp.dtype(out_dtype).itemsize
    sub_in = 8 * (4 // in_item)            # sublane granularity: f32 -> 8, bf16 -> 16
    sub_out = 8 * (4 // out_item)
    Cp = _round_up(C, 128)                 # lane padding of the channel axis
    Wp_s = _round_up(W + 2, sub_in)
    Wo_s = _round_up(W, sub_out)
    per_row = (2 * Wp_s * Cp * in_item     # main input tile, 2 pipeline bufs
               + 3 * Wp_s * Cp * in_item   # in-kernel window copy + shifted-slice copies
               + 2 * Wo_s * OCp * out_item  # output tile, 2 pipeline bufs
               + 2 * W * OCp * 4)          # f32 accumulator + pre-store temp
    const = (2 * 9 * _round_up(C, sub_in) * OCp * in_item  # weights, 2 bufs
             + 4 * Wp_s * Cp * in_item                     # two 1-row halo blocks, 2 bufs
             + 2 * 8 * OCp * 4)                            # bias
    cap = max(1, int((vmem_budget - const) // max(per_row, 1)))
    if H <= cap:
        return H
    best = 1
    for th in range(2, min(cap, H) + 1):
        if H % th == 0:
            best = th
    return best


def inception_forward(x_nchw, w1_oc, w3_oc, bn1, bn3, eps=1e-3,
                      compute_dtype=None, tile_rows=None, out_layout="NCHW"):
    """InceptionModule forward (eval-mode BN). x_nchw: (N, C, H, W).
    Returns (N, O1+O3, H, W), or NHWC if out_layout == "NHWC"."""
    N, C, H, W = x_nchw.shape
    O1, O3 = w1_oc.shape[0], w3_oc.shape[0]
    OC = O1 + O3
    OCp = _round_up(OC, 128)                       # lane-dense output slab
    cdt = jnp.dtype(x_nchw.dtype if compute_dtype is None else compute_dtype)

    # ---- fold eval-mode BatchNorm into per-channel scale / bias -------------
    def fold_bn(bn):
        gamma, beta, mean, var = bn
        scale = gamma / jnp.sqrt(var + eps)
        return scale.astype(jnp.float32), (beta - mean * scale).astype(jnp.float32)

    s1, b1 = fold_bn(bn1)
    s3, b3 = fold_bn(bn3)

    # ---- pack per-tap weights (9, C, OCp): BN scale folded, branch1 centre --
    w3_k = jnp.transpose(w3_oc, (2, 3, 1, 0)).astype(jnp.float32) * s3   # (3,3,C,O3)
    w1_k = jnp.transpose(w1_oc[:, :, 0, 0], (1, 0)).astype(jnp.float32) * s1  # (C,O1)
    w = jnp.zeros((3, 3, C, OCp), jnp.float32)
    w = w.at[:, :, :, O1:OC].set(w3_k)
    w = w.at[1, 1, :, :O1].set(w1_k)
    w = w.reshape(9, C, OCp).astype(cdt)
    bias = jnp.zeros((1, OCp), jnp.float32).at[0, :OC].set(jnp.concatenate([b1, b3]))

    # ---- generation-aware VMEM budget ---------------------------------------
    try:
        vmem_cap = int(pltpu.get_tpu_info().vmem_capacity_bytes)
    except Exception:
        vmem_cap = 64 << 20                        # conservative (v7x per-core)
    budget = vmem_cap // 3                         # target for the tile estimator
    vmem_limit = int(vmem_cap * 3 // 4)            # scoped VMEM limit, < physical

    # ---- row tiling ----------------------------------------------------------
    if tile_rows is not None:
        TH = tile_rows if H % tile_rows == 0 else max(
            th for th in range(1, min(tile_rows, H) + 1) if H % th == 0)
    else:
        TH = _pick_tile_rows(H, W, C, OCp, cdt, x_nchw.dtype, budget)
    NH = H // TH
    if N * NH < 2 and H > 1:                       # v7x megacore: >= 2 grid steps
        TH = max(th for th in range(1, H // 2 + 1) if H % th == 0)
        NH = H // TH
    Wp = W + 2

    # NCHW -> NHWC (channels on lanes) + 1-pixel spatial zero pad: one fused
    # XLA pass over the activations.
    xpad = jnp.pad(jnp.transpose(x_nchw, (0, 2, 3, 1)).astype(cdt),
                   ((0, 0), (1, 1), (1, 1), (0, 0)))

    out_nhwc = pl.pallas_call(
        inception_kernel,
        out_shape=jax.ShapeDtypeStruct((N, H, W, OCp), x_nchw.dtype),
        grid_spec=pltpu.PrefetchScalarGridSpec(
            num_scalar_prefetch=0,
            grid=(N, NH),
            in_specs=[
                pl.BlockSpec((1, TH, Wp, C), lambda n, h: (n, h, 0, 0)),
                pl.BlockSpec((1, 1, Wp, C), lambda n, h: (n, (h + 1) * TH, 0, 0)),
                pl.BlockSpec((1, 1, Wp, C), lambda n, h: (n, (h + 1) * TH + 1, 0, 0)),
                pl.BlockSpec((9, C, OCp), lambda n, h: (0, 0, 0)),
                pl.BlockSpec((1, OCp), lambda n, h: (0, 0)),
            ],
            out_specs=pl.BlockSpec((1, TH, W, OCp), lambda n, h: (n, h, 0, 0)),
        ),
        compiler_params=pltpu.CompilerParams(
            dimension_semantics=("parallel", "parallel"),
            vmem_limit_bytes=vmem_limit),
    )(xpad, xpad, xpad, w, bias)

    if OCp != OC:
        out_nhwc = out_nhwc[..., :OC]              # drop lane padding
    if out_layout == "NHWC":
        return out_nhwc
    # NCHW to match torch.cat([branch1, branch3], dim=1); the slice above fuses
    # into this transpose.  Keep out_layout="NHWC" downstream to skip it.
    return jnp.transpose(out_nhwc, (0, 3, 1, 2))


def reference_forward(x_nchw, w1_oc, w3_oc, bn1, bn3, eps=1e-3):
    """Plain-JAX reference (mirrors the PyTorch module, eval-mode BN)."""
    def conv_bn_relu(x, w, bn, pad):
        dn = lax.conv_dimension_numbers(x.shape, w.shape, ("NCHW", "OIHW", "NCHW"))
        y = lax.conv_general_dilated(x, w, (1, 1), [(pad, pad), (pad, pad)],
                                     dimension_numbers=dn)
        gamma, beta, mean, var = bn
        scale = (gamma / jnp.sqrt(var + eps)).reshape(1, -1, 1, 1)
        b = (beta - mean * gamma / jnp.sqrt(var + eps)).reshape(1, -1, 1, 1)
        return jnp.maximum(y * scale + b, 0.0)

    y1 = conv_bn_relu(x_nchw, w1_oc, bn1, 0)
    y3 = conv_bn_relu(x_nchw, w3_oc, bn3, 1)
    return jnp.concatenate([y1, y3], axis=1)


if __name__ == "__main__":
    N, C, H, W = 2, 4, 16, 16
    O1, O3 = 8, 16

    keys = jax.random.split(jax.random.PRNGKey(0), 11)
    x = jax.random.normal(keys[0], (N, C, H, W), jnp.float32)
    w1 = jax.random.normal(keys[1], (O1, C, 1, 1), jnp.float32) * 0.2
    w3 = jax.random.normal(keys[2], (O3, C, 3, 3), jnp.float32) * 0.2

    def rand_bn(kg, kb, km, kv, O):
        return (jax.random.uniform(kg, (O,), jnp.float32, 0.5, 1.5),
                jax.random.normal(kb, (O,), jnp.float32) * 0.1,
                jax.random.normal(km, (O,), jnp.float32) * 0.1,
                jax.random.uniform(kv, (O,), jnp.float32, 0.5, 1.5))

    bn1 = rand_bn(keys[3], keys[4], keys[5], keys[6], O1)
    bn3 = rand_bn(keys[7], keys[8], keys[9], keys[10], O3)

    ref = reference_forward(x, w1, w3, bn1, bn3)

    # f32 compute, explicit 8-row tiles (exercises the 2-row halo path, NH=2).
    out = jax.block_until_ready(
        inception_forward(x, w1, w3, bn1, bn3, tile_rows=8))
    assert out.shape == (N, O1 + O3, H, W), out.shape
    assert jnp.allclose(out, ref, atol=1e-4, rtol=1e-4), \
        float(jnp.max(jnp.abs(out - ref)))

    # bf16 compute (f32 accumulation on the MXU), auto tile pick.
    out_bf16 = jax.block_until_ready(
        inception_forward(x, w1, w3, bn1, bn3, compute_dtype=jnp.bfloat16))
    assert out_bf16.shape == (N, O1 + O3, H, W), out_bf16.shape
    assert jnp.allclose(out_bf16, ref, atol=1e-1, rtol=1e-1), \
        float(jnp.max(jnp.abs(out_bf16 - ref)))

    print("KERNEL_OK")
</pallas_src>

<mosaic_0001>
module attributes {stable_mosaic.version = 11 : i64} {
  func.func @inception_kernel(%arg0: i32, %arg1: i32, %arg2: memref<1x8x18x4xf32, #tpu.memory_space<vmem>>, %arg3: memref<1x1x18x4xf32, #tpu.memory_space<vmem>>, %arg4: memref<1x1x18x4xf32, #tpu.memory_space<vmem>>, %arg5: memref<9x4x128xf32, #tpu.memory_space<vmem>>, %arg6: memref<1x128xf32, #tpu.memory_space<vmem>>, %arg7: memref<1x8x16x128xf32, #tpu.memory_space<vmem>>) attributes {dimension_semantics = [#tpu.dimension_semantics<parallel>, #tpu.dimension_semantics<parallel>], iteration_bounds = array<i64: 2, 2>, scalar_prefetch = 0 : i64, scratch_operands = 0 : i64, tpu.core_type = #tpu.core_type<tc>, window_params = [{transform_indices = @transform_0, window_bounds = array<i64: 1, 8, 18, 4>}, {transform_indices = @transform_1, window_bounds = array<i64: 1, 1, 18, 4>}, {transform_indices = @transform_2, window_bounds = array<i64: 1, 1, 18, 4>}, {pipeline_mode = #tpu.pipeline_mode<synchronous>, transform_indices = @transform_3, window_bounds = array<i64: 9, 4, 128>}, {pipeline_mode = #tpu.pipeline_mode<synchronous>, transform_indices = @transform_4, window_bounds = array<i64: 1, 128>}, {transform_indices = @transform_5, window_bounds = array<i64: 1, 8, 16, 128>}]} {
    %c0 = arith.constant 0 : index
    %c0_0 = arith.constant 0 : index
    %c0_1 = arith.constant 0 : index
    %c0_2 = arith.constant 0 : index
    %0 = vector.load %arg2[%c0, %c0_0, %c0_1, %c0_2] : memref<1x8x18x4xf32, #tpu.memory_space<vmem>>, vector<1x8x18x4xf32>
    %1 = vector.shape_cast %0 : vector<1x8x18x4xf32> to vector<8x18x4xf32>
    %c0_3 = arith.constant 0 : index
    %c0_4 = arith.constant 0 : index
    %c0_5 = arith.constant 0 : index
    %c0_6 = arith.constant 0 : index
    %2 = vector.load %arg3[%c0_3, %c0_4, %c0_5, %c0_6] : memref<1x1x18x4xf32, #tpu.memory_space<vmem>>, vector<1x1x18x4xf32>
    %3 = vector.shape_cast %2 : vector<1x1x18x4xf32> to vector<1x18x4xf32>
    %c0_7 = arith.constant 0 : index
    %c0_8 = arith.constant 0 : index
    %c0_9 = arith.constant 0 : index
    %c0_10 = arith.constant 0 : index
    %4 = vector.load %arg4[%c0_7, %c0_8, %c0_9, %c0_10] : memref<1x1x18x4xf32, #tpu.memory_space<vmem>>, vector<1x1x18x4xf32>
    %5 = vector.shape_cast %4 : vector<1x1x18x4xf32> to vector<1x18x4xf32>
    %6 = tpu.concatenate %1, %3, %5 in 0 : vector<8x18x4xf32>, vector<1x18x4xf32>, vector<1x18x4xf32> -> vector<10x18x4xf32>
    %7 = vector.extract_strided_slice %6 {offsets = [0, 0, 0], sizes = [8, 16, 4], strides = [1, 1, 1]} : vector<10x18x4xf32> to vector<8x16x4xf32>
    %8 = vector.shape_cast %7 : vector<8x16x4xf32> to vector<128x4xf32>
    %c0_11 = arith.constant 0 : index
    %c0_12 = arith.constant 0 : index
    %c0_13 = arith.constant 0 : index
    %9 = vector.load %arg5[%c0_11, %c0_12, %c0_13] : memref<9x4x128xf32, #tpu.memory_space<vmem>>, vector<1x4x128xf32>
    %10 = vector.shape_cast %9 : vector<1x4x128xf32> to vector<4x128xf32>
    %cst = arith.constant dense<0.000000e+00> : vector<128x128xf32>
    %11 = tpu.matmul %8, %10, %cst {dimension_numbers = #tpu.dot_dimension_numbers<[1], [0], [0], [1], [0, 0, 1, 1], [], []>} : vector<128x4xf32>, vector<4x128xf32>, vector<128x128xf32> -> vector<128x128xf32>
    %12 = vector.extract_strided_slice %6 {offsets = [0, 1, 0], sizes = [8, 16, 4], strides = [1, 1, 1]} : vector<10x18x4xf32> to vector<8x16x4xf32>
    %13 = vector.shape_cast %12 : vector<8x16x4xf32> to vector<128x4xf32>
    %c1 = arith.constant 1 : index
    %c0_14 = arith.constant 0 : index
    %c0_15 = arith.constant 0 : index
    %14 = vector.load %arg5[%c1, %c0_14, %c0_15] : memref<9x4x128xf32, #tpu.memory_space<vmem>>, vector<1x4x128xf32>
    %15 = vector.shape_cast %14 : vector<1x4x128xf32> to vector<4x128xf32>
    %cst_16 = arith.constant dense<0.000000e+00> : vector<128x128xf32>
    %16 = tpu.matmul %13, %15, %cst_16 {dimension_numbers = #tpu.dot_dimension_numbers<[1], [0], [0], [1], [0, 0, 1, 1], [], []>} : vector<128x4xf32>, vector<4x128xf32>, vector<128x128xf32> -> vector<128x128xf32>
    %17 = arith.addf %11, %16 : vector<128x128xf32>
    %18 = vector.extract_strided_slice %6 {offsets = [0, 2, 0], sizes = [8, 16, 4], strides = [1, 1, 1]} : vector<10x18x4xf32> to vector<8x16x4xf32>
    %19 = vector.shape_cast %18 : vector<8x16x4xf32> to vector<128x4xf32>
    %c2 = arith.constant 2 : index
    %c0_17 = arith.constant 0 : index
    %c0_18 = arith.constant 0 : index
    %20 = vector.load %arg5[%c2, %c0_17, %c0_18] : memref<9x4x128xf32, #tpu.memory_space<vmem>>, vector<1x4x128xf32>
    %21 = vector.shape_cast %20 : vector<1x4x128xf32> to vector<4x128xf32>
    %cst_19 = arith.constant dense<0.000000e+00> : vector<128x128xf32>
    %22 = tpu.matmul %19, %21, %cst_19 {dimension_numbers = #tpu.dot_dimension_numbers<[1], [0], [0], [1], [0, 0, 1, 1], [], []>} : vector<128x4xf32>, vector<4x128xf32>, vector<128x128xf32> -> vector<128x128xf32>
    %23 = arith.addf %17, %22 : vector<128x128xf32>
    %24 = vector.extract_strided_slice %6 {offsets = [1, 0, 0], sizes = [8, 16, 4], strides = [1, 1, 1]} : vector<10x18x4xf32> to vector<8x16x4xf32>
    %25 = vector.shape_cast %24 : vector<8x16x4xf32> to vector<128x4xf32>
    %c3 = arith.constant 3 : index
    %c0_20 = arith.constant 0 : index
    %c0_21 = arith.constant 0 : index
    %26 = vector.load %arg5[%c3, %c0_20, %c0_21] : memref<9x4x128xf32, #tpu.memory_space<vmem>>, vector<1x4x128xf32>
    %27 = vector.shape_cast %26 : vector<1x4x128xf32> to vector<4x128xf32>
    %cst_22 = arith.constant dense<0.000000e+00> : vector<128x128xf32>
    %28 = tpu.matmul %25, %27, %cst_22 {dimension_numbers = #tpu.dot_dimension_numbers<[1], [0], [0], [1], [0, 0, 1, 1], [], []>} : vector<128x4xf32>, vector<4x128xf32>, vector<128x128xf32> -> vector<128x128xf32>
    %29 = arith.addf %23, %28 : vector<128x128xf32>
    %30 = vector.extract_strided_slice %6 {offsets = [1, 1, 0], sizes = [8, 16, 4], strides = [1, 1, 1]} : vector<10x18x4xf32> to vector<8x16x4xf32>
    %31 = vector.shape_cast %30 : vector<8x16x4xf32> to vector<128x4xf32>
    %c4 = arith.constant 4 : index
    %c0_23 = arith.constant 0 : index
    %c0_24 = arith.constant 0 : index
    %32 = vector.load %arg5[%c4, %c0_23, %c0_24] : memref<9x4x128xf32, #tpu.memory_space<vmem>>, vector<1x4x128xf32>
    %33 = vector.shape_cast %32 : vector<1x4x128xf32> to vector<4x128xf32>
    %cst_25 = arith.constant dense<0.000000e+00> : vector<128x128xf32>
    %34 = tpu.matmul %31, %33, %cst_25 {dimension_numbers = #tpu.dot_dimension_numbers<[1], [0], [0], [1], [0, 0, 1, 1], [], []>} : vector<128x4xf32>, vector<4x128xf32>, vector<128x128xf32> -> vector<128x128xf32>
    %35 = arith.addf %29, %34 : vector<128x128xf32>
    %36 = vector.extract_strided_slice %6 {offsets = [1, 2, 0], sizes = [8, 16, 4], strides = [1, 1, 1]} : vector<10x18x4xf32> to vector<8x16x4xf32>
    %37 = vector.shape_cast %36 : vector<8x16x4xf32> to vector<128x4xf32>
    %c5 = arith.constant 5 : index
    %c0_26 = arith.constant 0 : index
    %c0_27 = arith.constant 0 : index
    %38 = vector.load %arg5[%c5, %c0_26, %c0_27] : memref<9x4x128xf32, #tpu.memory_space<vmem>>, vector<1x4x128xf32>
    %39 = vector.shape_cast %38 : vector<1x4x128xf32> to vector<4x128xf32>
    %cst_28 = arith.constant dense<0.000000e+00> : vector<128x128xf32>
    %40 = tpu.matmul %37, %39, %cst_28 {dimension_numbers = #tpu.dot_dimension_numbers<[1], [0], [0], [1], [0, 0, 1, 1], [], []>} : vector<128x4xf32>, vector<4x128xf32>, vector<128x128xf32> -> vector<128x128xf32>
    %41 = arith.addf %35, %40 : vector<128x128xf32>
    %42 = vector.extract_strided_slice %6 {offsets = [2, 0, 0], sizes = [8, 16, 4], strides = [1, 1, 1]} : vector<10x18x4xf32> to vector<8x16x4xf32>
    %43 = vector.shape_cast %42 : vector<8x16x4xf32> to vector<128x4xf32>
    %c6 = arith.constant 6 : index
    %c0_29 = arith.constant 0 : index
    %c0_30 = arith.constant 0 : index
    %44 = vector.load %arg5[%c6, %c0_29, %c0_30] : memref<9x4x128xf32, #tpu.memory_space<vmem>>, vector<1x4x128xf32>
    %45 = vector.shape_cast %44 : vector<1x4x128xf32> to vector<4x128xf32>
    %cst_31 = arith.constant dense<0.000000e+00> : vector<128x128xf32>
    %46 = tpu.matmul %43, %45, %cst_31 {dimension_numbers = #tpu.dot_dimension_numbers<[1], [0], [0], [1], [0, 0, 1, 1], [], []>} : vector<128x4xf32>, vector<4x128xf32>, vector<128x128xf32> -> vector<128x128xf32>
    %47 = arith.addf %41, %46 : vector<128x128xf32>
    %48 = vector.extract_strided_slice %6 {offsets = [2, 1, 0], sizes = [8, 16, 4], strides = [1, 1, 1]} : vector<10x18x4xf32> to vector<8x16x4xf32>
    %49 = vector.shape_cast %48 : vector<8x16x4xf32> to vector<128x4xf32>
    %c7 = arith.constant 7 : index
    %c0_32 = arith.constant 0 : index
    %c0_33 = arith.constant 0 : index
    %50 = vector.load %arg5[%c7, %c0_32, %c0_33] : memref<9x4x128xf32, #tpu.memory_space<vmem>>, vector<1x4x128xf32>
    %51 = vector.shape_cast %50 : vector<1x4x128xf32> to vector<4x128xf32>
    %cst_34 = arith.constant dense<0.000000e+00> : vector<128x128xf32>
    %52 = tpu.matmul %49, %51, %cst_34 {dimension_numbers = #tpu.dot_dimension_numbers<[1], [0], [0], [1], [0, 0, 1, 1], [], []>} : vector<128x4xf32>, vector<4x128xf32>, vector<128x128xf32> -> vector<128x128xf32>
    %53 = arith.addf %47, %52 : vector<128x128xf32>
    %54 = vector.extract_strided_slice %6 {offsets = [2, 2, 0], sizes = [8, 16, 4], strides = [1, 1, 1]} : vector<10x18x4xf32> to vector<8x16x4xf32>
    %55 = vector.shape_cast %54 : vector<8x16x4xf32> to vector<128x4xf32>
    %c8 = arith.constant 8 : index
    %c0_35 = arith.constant 0 : index
    %c0_36 = arith.constant 0 : index
    %56 = vector.load %arg5[%c8, %c0_35, %c0_36] : memref<9x4x128xf32, #tpu.memory_space<vmem>>, vector<1x4x128xf32>
    %57 = vector.shape_cast %56 : vector<1x4x128xf32> to vector<4x128xf32>
    %cst_37 = arith.constant dense<0.000000e+00> : vector<128x128xf32>
    %58 = tpu.matmul %55, %57, %cst_37 {dimension_numbers = #tpu.dot_dimension_numbers<[1], [0], [0], [1], [0, 0, 1, 1], [], []>} : vector<128x4xf32>, vector<4x128xf32>, vector<128x128xf32> -> vector<128x128xf32>
    %59 = arith.addf %53, %58 : vector<128x128xf32>
    %c0_38 = arith.constant 0 : index
    %c0_39 = arith.constant 0 : index
    %60 = vector.load %arg6[%c0_38, %c0_39] : memref<1x128xf32, #tpu.memory_space<vmem>>, vector<1x128xf32>
    %61 = vector.broadcast %60 : vector<1x128xf32> to vector<128x128xf32>
    %62 = arith.addf %59, %61 : vector<128x128xf32>
    %cst_40 = arith.constant 0.000000e+00 : f32
    %63 = vector.broadcast %cst_40 : f32 to vector<128x128xf32>
    %64 = arith.maximumf %62, %63 : vector<128x128xf32>
    %65 = vector.shape_cast %64 : vector<128x128xf32> to vector<1x8x16x128xf32>
    %c0_41 = arith.constant 0 : index
    %c0_42 = arith.constant 0 : index
    %c0_43 = arith.constant 0 : index
    %c0_44 = arith.constant 0 : index
    %66 = vector.load %arg7[%c0_41, %c0_42, %c0_43, %c0_44] : memref<1x8x16x128xf32, #tpu.memory_space<vmem>>, vector<1x8x16x128xf32>
    tpu.vector_store %arg7[%c0_41, %c0_42, %c0_43, %c0_44], %65 {strides = array<i32>} : memref<1x8x16x128xf32, #tpu.memory_space<vmem>>, vector<1x8x16x128xf32>,
    return
  }
  func.func @transform_0(%arg0: i32, %arg1: i32) -> (i32, i32, i32, i32) {
    %c0_i32 = arith.constant 0 : i32
    %c0_i32_0 = arith.constant 0 : i32
    %c0_i32_1 = arith.constant 0 : i32
    return %arg0, %arg1, %c0_i32, %c0_i32_0 : i32, i32, i32, i32
  }
  func.func @transform_1(%arg0: i32, %arg1: i32) -> (i32, i32, i32, i32) {
    %c1_i32 = arith.constant 1 : i32
    %0 = arith.addi %arg1, %c1_i32 : i32
    %c8_i32 = arith.constant 8 : i32
    %1 = arith.muli %0, %c8_i32 : i32
    %c0_i32 = arith.constant 0 : i32
    %c0_i32_0 = arith.constant 0 : i32
    %c0_i32_1 = arith.constant 0 : i32
    return %arg0, %1, %c0_i32, %c0_i32_0 : i32, i32, i32, i32
  }
  func.func @transform_2(%arg0: i32, %arg1: i32) -> (i32, i32, i32, i32) {
    %c1_i32 = arith.constant 1 : i32
    %0 = arith.addi %arg1, %c1_i32 : i32
    %c8_i32 = arith.constant 8 : i32
    %1 = arith.muli %0, %c8_i32 : i32
    %c1_i32_0 = arith.constant 1 : i32
    %2 = arith.addi %1, %c1_i32_0 : i32
    %c0_i32 = arith.constant 0 : i32
    %c0_i32_1 = arith.constant 0 : i32
    %c0_i32_2 = arith.constant 0 : i32
    return %arg0, %2, %c0_i32, %c0_i32_1 : i32, i32, i32, i32
  }
  func.func @transform_3(%arg0: i32, %arg1: i32) -> (i32, i32, i32) {
    %c0_i32 = arith.constant 0 : i32
    %c0_i32_0 = arith.constant 0 : i32
    %c0_i32_1 = arith.constant 0 : i32
    %c0_i32_2 = arith.constant 0 : i32
    return %c0_i32, %c0_i32_0, %c0_i32_1 : i32, i32, i32
  }
  func.func @transform_4(%arg0: i32, %arg1: i32) -> (i32, i32) {
    %c0_i32 = arith.constant 0 : i32
    %c0_i32_0 = arith.constant 0 : i32
    %c0_i32_1 = arith.constant 0 : i32
    return %c0_i32, %c0_i32_0 : i32, i32
  }
  func.func @transform_5(%arg0: i32, %arg1: i32) -> (i32, i32, i32, i32) {
    %c0_i32 = arith.constant 0 : i32
    %c0_i32_0 = arith.constant 0 : i32
    %c0_i32_1 = arith.constant 0 : i32
    return %arg0, %arg1, %c0_i32, %c0_i32_0 : i32, i32, i32, i32
  }
}

</mosaic_0001>

<bundles_post_ra>
// kernel: tpu_custom_call.1
= control target key start
LH: loop header
LB: loop body
LE: loop exit
PB: predicated region body
PF: predicated region fallthrough
CT: control target
= control target key end

     0   :  { %10 = vsyncpa [#allocation3], 0  ;;  %s4126_s0 = inlined_call_operand.vmem [shape: f32[2,18,18,4], index: 0, kind: input, shape index: {}]   ;;  %s4127_s1 = inlined_call_operand.vmem [shape: f32[2,18,18,4], index: 1, kind: input, shape index: {}]   ;;  %s4128_s2 = inlined_call_operand.vmem [shape: f32[2,18,18,4], index: 2, kind: input, shape index: {}]   ;;  %s4129_s3 = inlined_call_operand.vmem [shape: f32[9,4,128], index: 3, kind: input, shape index: {}]   ;;  %s4130_s4 = inlined_call_operand.vmem [shape: f32[1,128], index: 4, kind: input, shape index: {}]   ;;  %s4131_s5 = inlined_call_operand.hbm [shape: f32[2,16,16,128], index: 5, kind: output, shape index: {}]  }
   0x1   :  { %12 = vsyncpa [#allocation3 + $0x1], 0  ;;  %s3120_s18 = smov 0   ;;  %s3122_s19 = smov 0  }
   0x2   :  { %s3124_s20 = smov 0   ;;  %s3126_s21 = smov 0  }
   0x3   :  { %s3128_s22 = smov 0   ;;  %s3130_s23 = smov 0  }
   0x4   :  { %s3132_s24 = smov 0   ;;  %s3134_s25 = smov 0  }
   0x5 LB: > { %s2329_s26 = sadd.s32 4294967295, %s3085_s25   ;;  %s2330_s27 = sadd.s32 4294967294, %s3085_s25   ;;  %s3085_s25 = sphi %s3134_s25, %s18_s25   ;;  %s3081_s24 = sphi %s3132_s24, %s4179_s24   ;;  %s3077_s23 = sphi %s3130_s23, %s4178_s23   ;;  %s3073_s22 = sphi %s3128_s22, %s4177_s22   ;;  %s3069_s21 = sphi %s3126_s21, %s4176_s21   ;;  %s3065_s20 = sphi %s3124_s20, %s4175_s20   ;;  %s3061_s19 = sphi %s3122_s19, %s4174_s19   ;;  %s3057_s18 = sphi %s3120_s18, %s4173_s18  }
   0x6   : > { %s27_s28 = sadd.s32 1, %s3077_s23  ;;  %s30_s29 = sadd.s32 1, %s3081_s24 }
   0x7   : > { %p28_p0 = scmp.ge.s32.totalorder %s27_s28, 2  ;;  %p185_p1 = scmp.ne.s32.totalorder %s3065_s20, %s3061_s19 }
   0x8   : > { %p186_p2 = scmp.eq.s32.totalorder %s2329_s26, 3  ;;  %p191_p5 = scmp.ne.s32.totalorder %s3061_s19, %s3057_s18 }
   0x9   : > { %s4181_s28 = smov (%p28_p0, %s27_s28), 0  ;;  %s4183_s29 = smov (!%p28_p0, %s30_s29), %s3081_s24 }
   0xa   : > { %s171_s30 = ssub.s32 %s3077_s23, %s4181_s28  ;;  %p3171_p3 = por %p186_p2, %p185_p1 }
   0xb   : > { %p32_p4 = scmp.ge.s32.totalorder %s4183_s29, 2  ;;  %p192_p6 = scmp.eq.s32.totalorder %s2330_s27, 3 }
   0xc   : > { %p2337_p7 = scmp.ge.s32.totalorder %s3085_s25, 1  ;;  %p274_p9 = scmp.lt.s32.totalorder %s3085_s25, 5 }
   0xd   : > { %s4185_s29 = smov (%p32_p4, %s4183_s29), 0  ;;  %p3180_p8 = por %p192_p6, %p191_p5 }
   0xe   : > { %s170_s8 = ssub.s32 %s3081_s24, %s4185_s29  ;;  %s175_s9 = sadd.s32 1, %s3065_s20 }
   0xf   : > { %s172_s10 = sor.u32 %s171_s30, %s170_s8  ;;  %p275_p10 = pnand %p2337_p7, %p274_p9 }
  0x10   : > { %p173_p11 = scmp.eq.s32.totalorder %s172_s10, 0 }
  0x11   : > { %278 = sbr.rel (%p275_p10) target bundleno = 395 (0x18b), region = 40 }
  0x12   : > { %s3189_s11 = scalar_select %p173_p11, %s3065_s20, %s175_s9  }
  0x16   : > { %v2345_v0 = vld [vmem:[%s4129_s3 + $0x4] sm:$0xf]  ;;  %vm516_vm0 = vcmask 1043456   ;;  %s2339_s14 = sshll.u32 %s3069_s21, 3  ;;  %p341_p12 = scmp.lt.s32.totalorder %s3073_s22, 1  ;;  %vm440_vm1 = vcmask 1046528  }
  0x17   : > { %2914 = vmatprep.subr.msk.mxu1 %vm516_vm0, %v2345_v0  ;;  %2680 = vmatprep.subr.msk.mxu0 %vm516_vm0, %v2345_v0  ;;  %p343_p13 = scmp.lt.s32.totalorder %s2339_s14, 17  ;;  %v3201_v1 = vld [vmem:[%s4129_s3] sm:$0xf]  ;;  %v2380_v2 = vld [vmem:[%s4129_s3 + $0x8] sm:$0xf]  ;;  %s3214_s10 = sadd.s32 8, %s2339_s14 }
  0x18   : > { %2915 = vmatpush3.msk.msra.mxu1 %vm516_vm0, %v2345_v0  ;;  %2681 = vmatpush3.msk.msra.mxu0 %vm516_vm0, %v2345_v0  ;;  %s342_s27 = scalar_select %p341_p12, %s3073_s22, 1  ;;  %vm483_vm2 = vcmask 31744   ;;  %v3271_v21 = vld [vmem:[%s4129_s3 + $0xc] sm:$0xf]  ;;  %v3294_v28 = vld [vmem:[%s4129_s3 + $0x10] sm:$0xf] }
  0x19   : > { %s344_s30 = scalar_select %p343_p13, %s2339_s14, 17  ;;  %2706 = vmatprep.subr.msk.mxu1 %vm516_vm0, %v3201_v1  ;;  %2732 = vmatprep.subr.msk.mxu0 %vm516_vm0, %v2380_v2  ;;  %vm845_vm3 = vcmask 1045504  }
  0x1a   : > { %s3212_s8 = smul.u32 54, %s342_s27  ;;  %p360_p0 = scmp.lt.s32.totalorder %s3214_s10, 17 }
  0x1b   : > { %s2916_s9 = smul.u32 3, %s344_s30  ;;  %s371_s14 = sadd.s32 1, %s3214_s10 }
  0x1c   : > { %p3252_p1 = scmp.lt.s32.totalorder %s371_s14, 17 }
  0x1d   : > { %s347_s12 = sadd.s32 %s3212_s8, %s2916_s9 }
  0x1e   : > { %s2340_s13 = sshll.u32 %s347_s12, 3  ;;  %s4187_s14 = smov (!%p3252_p1, %s371_s14), 17 }
  0x1f   : > { %s3221_s17 = scalar_lea.vmem %s4126_s0, %s2340_s13  ;;  %s2919_s16 = smul.u32 3, %s4187_s14 }
  0x20   : > { %v3225_v3 = vld [vmem:[%s3221_s17] sm:$0xff]  ;;  %v3228_v4 = vld [vmem:[%s3221_s17 + $0x8] sm:$0xff]  ;;  %v3240_v10 = vld [vmem:[%s3221_s17 + $0x10] sm:$0x3]  ;;  %s3276_s9 = scalar_select %p360_p0, %s3214_s10, 17 }
  0x21   : > { %v3231_v5 = vld [vmem:[%s3221_s17 + $0x60] sm:$0xff]  ;;  %v441_v6 = vrot.slane %v3225_v3, 1  ;;  %v442_v7 = vrot.slane %v3228_v4, 1  ;;  %v3236_v8 = vld [vmem:[%s3221_s17 + $0x68] sm:$0xff]  ;;  %v444_v12 = vrot.slane %v3240_v10, 1  ;;  %v3248_v14 = vld [vmem:[%s3221_s17 + $0x18] sm:$0xff] }
  0x22   : > { %v461_v9 = vrot.slane %v3231_v5, 1  ;;  %v462_v11 = vrot.slane %v3236_v8, 1  ;;  %v3245_v13 = vld [vmem:[%s3221_s17 + $0x70] sm:$0x3]  ;;  %v3259_v17 = vld [vmem:[%s3221_s17 + $0x20] sm:$0xff]  ;;  %v446_v18 = vrot.slane %v3248_v14, 1 }
  0x23   : > { %v443_v15 = vsel %vm440_vm1, %v441_v6, %v442_v7  ;;  %v464_v16 = vrot.slane %v3245_v13, 1  ;;  %v3263_v19 = vld [vmem:[%s3221_s17 + $0x78] sm:$0xff]  ;;  %v3266_v20 = vld [vmem:[%s3221_s17 + $0x80] sm:$0xff]  ;;  %v445_v23 = vsel %vm440_vm1, %v442_v7, %v444_v12  ;;  %v447_v24 = vrot.slane %v3259_v17, 1  ;;  %v3286_v26 = vld [vmem:[%s3221_s17 + $0x28] sm:$0x3] }
  0x24   : > { %2682 = vmatprep.mubr.msk.f32.mxu0 %vm483_vm2, %v443_v15  ;;  %v3280_v22 = vsel %vm440_vm1, %v461_v9, %v462_v11  ;;  %v466_v25 = vrot.slane %v3263_v19, 1  ;;  %v3289_v27 = vld [vmem:[%s3221_s17 + $0x88] sm:$0x3]  ;;  %v467_v30 = vrot.slane %v3266_v20, 1  ;;  %v449_v31 = vrot.slane %v3286_v26, 1  ;;  %v3306_v33 = vld [vmem:[%s3221_s17 + $0x30] sm:$0xff] }
  0x25   : > { %2694 = vmatprep.mubr.msk.f32.mxu1 %vm483_vm2, %v3280_v22  ;;  %2683 = vmatmul.mubr.msk.f32.vlgmr.msra.gmra.mxu0 %vm483_vm2, %v445_v23  ;;  %v3300_v29 = vsel %vm440_vm1, %v462_v11, %v464_v16  ;;  %v469_v32 = vrot.slane %v3289_v27, 1  ;;  %v3309_v34 = vld [vmem:[%s3221_s17 + $0x38] sm:$0xff]  ;;  %v3312_v35 = vld [vmem:[%s3221_s17 + $0x90] sm:$0xff]  ;;  %v3318_v36 = vsel %vm440_vm1, %v446_v18, %v447_v24  ;;  %v451_v37 = vrot.slane %v3306_v33, 1  ;;  %v3327_v41 = vld [vmem:[%s3221_s17 + $0x40] sm:$0x3] }
  0x26   : > { %2695 = vmatmul.mubr.msk.f32.vlgmr.msra.gmra.mxu1 %vm483_vm2, %v3300_v29  ;;  %2733 = vmatpush3.msk.msra.mxu0 %vm516_vm0, %v2380_v2  ;;  %v452_v38 = vrot.slane %v3309_v34, 1  ;;  %v3323_v39 = vld [vmem:[%s3221_s17 + $0x98] sm:$0xff]  ;;  %v471_v40 = vrot.slane %v3312_v35, 1  ;;  %v3334_v42 = vsel %vm440_vm1, %v466_v25, %v467_v30  ;;  %v3337_v43 = vsel %vm440_vm1, %v447_v24, %v449_v31  ;;  %v3344_v46 = vld [vmem:[%s3221_s17 + $0xa0] sm:$0x3]  ;;  %v3347_v47 = vld [vmem:[%s3221_s17 + $0x48] sm:$0xff] }
  0x27   : > { %2707 = vmatpush3.msk.msra.mxu1 %vm516_vm0, %v3201_v1  ;;  %2685 = vmatprep.mubr.msk.f32.mxu0 %vm483_vm2, %v3318_v36  ;;  %v3340_v44 = vsel %vm440_vm1, %v467_v30, %v469_v32  ;;  %v472_v45 = vrot.slane %v3323_v39, 1  ;;  %v3350_v48 = vld [vmem:[%s3221_s17 + $0x50] sm:$0xff]  ;;  %s2918_s15 = smul.u32 3, %s3276_s9  ;;  %v454_v50 = vrot.slane %v3327_v41, 1  ;;  %v474_v51 = vrot.slane %v3344_v46, 1  ;;  %v3362_v53 = vld [vmem:[%s3221_s17 + $0xa8] sm:$0xff] }
  0x28   : > { %2697 = vmatprep.mubr.msk.f32.mxu1 %vm483_vm2, %v3334_v42  ;;  %v3356_v49 = vsel %vm440_vm1, %v451_v37, %v452_v38  ;;  %v456_v52 = vrot.slane %v3347_v47, 1  ;;  %v3365_v54 = vld [vmem:[%s3221_s17 + $0xb0] sm:$0xff]  ;;  %2758 = vmatprep.subr.msk.mxu1 %vm516_vm0, %v3271_v21  ;;  %v457_v56 = vrot.slane %v3350_v48, 1  ;;  %v476_v57 = vrot.slane %v3362_v53, 1  ;;  %v3382_v59 = vld [vmem:[%s3221_s17 + $0x58] sm:$0x3] }
  0x29   : > { %2686 = vmatmul.mubr.msk.f32.gmra.mxu0 %vm483_vm2, %v3337_v43  ;;  %v3376_v55 = vsel %vm440_vm1, %v471_v40, %v472_v45  ;;  %v477_v58 = vrot.slane %v3365_v54, 1  ;;  %2784 = vmatprep.subr.msk.mxu0 %vm516_vm0, %v3294_v28  ;;  %s364_s10 = sadd.s32 %s2918_s15, %s3212_s8  ;;  %v3392_v60 = vsel %vm440_vm1, %v452_v38, %v454_v50  ;;  %v459_v61 = vrot.slane %v3382_v59, 1  ;;  %v3396_v62 = vld [vmem:[%s3221_s17 + $0xb8] sm:$0x3]  ;;  %s378_s17 = sadd.s32 %s2919_s16, %s3212_s8  ;;  %v3458_v40 = vld [vmem:[%s4129_s3 + $0x14] sm:$0xf] }
  0x2a   : > { %2698 = vmatmul.mubr.msk.f32.gmra.mxu1 %vm483_vm2, %v3340_v44  ;;  %2688 = vmatprep.mubr.msk.f32.mxu0 %vm483_vm2, %v3356_v49  ;;  %v846_v63 = vrot.slane %v3225_v3, 2  ;;  %v3402_v0 = vsel %vm440_vm1, %v472_v45, %v474_v51  ;;  %v3405_v1 = vsel %vm440_vm1, %v456_v52, %v457_v56  ;;  %v479_v2 = vrot.slane %v3396_v62, 1  ;;  %s2342_s26 = sshll.u32 %s364_s10, 3  ;;  %s2344_s8 = sshll.u32 %s378_s17, 3 }
  0x2b   : > { %2700 = vmatprep.mubr.msk.f32.mxu1 %vm483_vm2, %v3376_v55  ;;  %v847_v6 = vrot.slane %v3228_v4, 2  ;;  %v3410_v7 = vsel %vm440_vm1, %v476_v57, %v477_v58  ;;  %v849_v9 = vrot.slane %v3240_v10, 2  ;;  %v3421_v11 = vsel %vm440_vm1, %v457_v56, %v459_v61  ;;  %s366_s30 = scalar_lea.vmem %s4127_s1, %s2342_s26  ;;  %s380_s13 = scalar_lea.vmem %s4128_s2, %s2344_s8  ;;  %v3482_v61 = vld [vmem:[%s4129_s3 + $0x18] sm:$0xf] }
  0x2c   : > { %v3429_v12 = vsel %vm440_vm1, %v477_v58, %v479_v2  ;;  %v851_v15 = vrot.slane %v3248_v14, 2  ;;  %v852_v16 = vrot.slane %v3259_v17, 2  ;;  %v3436_v18 = vld [vmem:[%s366_s30] sm:$0xff]  ;;  %v854_v24 = vrot.slane %v3286_v26, 2  ;;  %v3445_v31 = vld [vmem:[%s366_s30 + $0x8] sm:$0xff]  ;;  %s332_s8 = sand.u32 1, %s3061_s19  }
  0x2d   : > { %2689 = vmatmul.mubr.msk.f32.gmra.mxu0 %vm483_vm2, %v3392_v60  ;;  %v848_v10 = vsel %vm845_vm3, %v846_v63, %v847_v6  ;;  %v850_v23 = vsel %vm845_vm3, %v847_v6, %v849_v9  ;;  %v856_v25 = vrot.slane %v3306_v33, 2  ;;  %v857_v30 = vrot.slane %v3309_v34, 2  ;;  %v411_v32 = vld [vmem:[%s366_s30 + $0x10] sm:$0x3]  ;;  %v3467_v52 = vld [vmem:[%s380_s13] sm:$0xff]  ;;  %s2526_s10 = sshll.u32 %s3069_s21, 4 }
  0x2e   : > { %2701 = vmatmul.mubr.msk.f32.gmra.mxu1 %vm483_vm2, %v3402_v0  ;;  %2691 = vmatprep.mubr.msk.f32.mxu0 %vm483_vm2, %v3405_v1  ;;  %v859_v37 = vrot.slane %v3327_v41, 2  ;;  %v861_v38 = vrot.slane %v3347_v47, 2  ;;  %v862_v26 = vrot.slane %v3350_v48, 2  ;;  %v1257_v45 = vrot.slane %v3436_v18, 1  ;;  %v414_v56 = vld [vmem:[%s380_s13 + $0x10] sm:$0x3] }
  0x2f   : > { %2703 = vmatprep.mubr.msk.f32.mxu1 %vm483_vm2, %v3410_v7  ;;  %v3463_v50 = vsel %vm845_vm3, %v851_v15, %v852_v16  ;;  %v1258_v41 = vrot.slane %v3445_v31, 1  ;;  %v1260_v51 = vrot.slane %v411_v32, 1  ;;  %v3474_v57 = vsel %vm845_vm3, %v852_v16, %v854_v24  ;;  %s2510_s16 = sshll.u32 %s3073_s22, 5  ;;  %s4075_s30 = scalar_lea.sflag [#allocation3], %s332_s8 }
  0x30   : > { %v3477_v58 = vsel %vm845_vm3, %v856_v25, %v857_v30  ;;  %v1433_v63 = vrot.slane %v3445_v31, 2  ;;  %v1780_v2 = vrot.slane %v3467_v52, 1  ;;  %v1955_v6 = vrot.slane %v3467_v52, 2  ;;  %s2199_s26 = sadd.s32 %s2526_s10, %s2510_s16  ;;  %s3087_s12 = smov [#allocation2]  }
  0x31   : > { %2692 = vmatmul.mubr.msk.f32.gmra.mxu0 %vm483_vm2, %v3421_v11  ;;  %v1435_v9 = vrot.slane %v411_v32, 2  ;;  %v3511_v24 = vsel %vm845_vm3, %v857_v30, %v859_v37  ;;  %v1958_v32 = vrot.slane %v414_v56, 2  ;;  %s2511_s21 = sshll.u32 %s2199_s26, 7 }
  0x32   : > { %2704 = vmatmul.mubr.msk.f32.gmra.mxu1 %vm483_vm2, %v3429_v12  ;;  %2734 = vmatprep.mubr.msk.f32.mxu0 %vm483_vm2, %v848_v10  ;;  %v3497_v10 = vld [vmem:[%s380_s13 + $0x8] sm:$0xff]  ;;  %s2338_s13 = sshll.u32 %s332_s8, 7  ;;  %s4067_s27 = scalar_lea.hbm %s4131_s5, %s2511_s21 }
  0x33   : > { %2708 = vmatprep.mubr.msk.f32.mxu1 %vm483_vm2, %v3225_v3  ;;  %v1432_v3 = vrot.slane %v3436_v18, 2  ;;  %v1781_v15 = vrot.slane %v3497_v10, 1  ;;  %v1956_v16 = vrot.slane %v3497_v10, 2  ;;  %v3516_v25 = vsel %vm845_vm3, %v1433_v63, %v1435_v9  ;;  %s3996_s15 = scalar_lea.vmem [#allocation2], %s2338_s13  ;;  %s2997_s13 = sshll.u32 %s3087_s12, 4  ;;  %s2998_s13 = int_to_ptr.vmem [resolvable:$false] %s2997_s13 }
  0x34   : > { %v872_v9 = vrot.slane %v3266_v20, 2  ;;  %s2202_s22 = sshll.u32 %s3996_s15, 4  ;;  %s2999_s10 = scalar_lea.vmem %s2998_s13, 4096  ;;  %s4069_s22 = int_to_ptr.vmem [resolvable:$true] %s2202_s22 }
  0x35   : > { %2735 = vmatmul.mubr.msk.f32.vlgmr.msra.gmra.mxu0 %vm483_vm2, %v850_v23  ;;  %v1783_v23 = vrot.slane %v414_v56, 1  ;;  %v3527_v30 = vsel %vm845_vm3, %v1955_v6, %v1956_v16  ;;  %v867_v56 = vrot.slane %v3236_v8, 2  ;;  %v871_v6 = vrot.slane %v3263_v19, 2  ;;  %s2993_s9 = scalar_lea.vmem %s4069_s22, 2048  ;;  %p3000_p6 = scmp.lt.s32.totalorder %s4069_s22, %s2998_s13 }
  0x36   : > { %2709 = vmatmul.mubr.msk.f32.vlgmr.msra.gmra.mxu1 %vm483_vm2, %v3228_v4  ;;  %2785 = vmatpush3.msk.msra.mxu0 %vm516_vm0, %v3294_v28  ;;  %v3491_v4 = vsel %vm440_vm1, %v1257_v45, %v1258_v41  ;;  %v3494_v28 = vsel %vm440_vm1, %v1258_v41, %v1260_v51  ;;  %v864_v45 = vrot.slane %v3382_v59, 2  ;;  %v3535_v41 = vsel %vm845_vm3, %v861_v38, %v862_v26  ;;  %p2994_p2 = scmp.ne.s32.totalorder %s4069_s22, %s2993_s9  ;;  %p3001_p7 = scmp.lt.s32.totalorder %s2999_s10, %s2993_s9 }
  0x37   : > { %2759 = vmatpush3.msk.msra.mxu1 %vm516_vm0, %v3271_v21  ;;  %2711 = vmatprep.mubr.msk.f32.mxu1 %vm483_vm2, %v3248_v14  ;;  %v3504_v21 = vsel %vm845_vm3, %v1432_v3, %v1433_v63  ;;  %v3524_v3 = vsel %vm440_vm1, %v1780_v2, %v1781_v15  ;;  %v3530_v37 = vsel %vm440_vm1, %v1781_v15, %v1783_v23  ;;  %v866_v51 = vrot.slane %v3231_v5, 2 }
  0x38   : > { %2737 = vmatprep.mubr.msk.f32.mxu0 %vm483_vm2, %v3463_v50  ;;  %2810 = vmatprep.subr.msk.mxu1 %vm516_vm0, %v3458_v40  ;;  %v3540_v59 = vsel %vm845_vm3, %v1956_v16, %v1958_v32  ;;  %v3549_v63 = vsel %vm845_vm3, %v862_v26, %v864_v45  ;;  %v869_v38 = vrot.slane %v3245_v13, 2  ;;  %v874_v26 = vrot.slane %v3289_v27, 2  ;;  %p2995_p4 = pnand %p2994_p2, %p3171_p3  ;;  %p3002_p9 = por %p3001_p7, %p3000_p6 }
  0x39   : > { %2738 = vmatmul.mubr.msk.f32.gmra.mxu0 %vm483_vm2, %v3474_v57  ;;  %2836 = vmatprep.subr.msk.mxu0 %vm516_vm0, %v3482_v61  ;;  %v3555_v2 = vsel %vm845_vm3, %v866_v51, %v867_v56  ;;  %v3572_v15 = vsel %vm845_vm3, %v871_v6, %v872_v9  ;;  %v876_v16 = vrot.slane %v3312_v35, 2  ;;  %v877_v23 = vrot.slane %v3323_v39, 2 }
  0x3a   : > { %2712 = vmatmul.mubr.msk.f32.gmra.mxu1 %vm483_vm2, %v3259_v17  ;;  %2740 = vmatprep.mubr.msk.f32.mxu0 %vm483_vm2, %v3477_v58  ;;  %v3566_v13 = vsel %vm845_vm3, %v867_v56, %v869_v38  ;;  %v3583_v27 = vsel %vm845_vm3, %v872_v9, %v874_v26  ;;  %v879_v32 = vrot.slane %v3344_v46, 2  ;;  %v881_v51 = vrot.slane %v3362_v53, 2  ;;  %p2996_p5 = pneg %p2995_p4 }
  0x3b   : > { %2714 = vmatprep.mubr.msk.f32.mxu1 %vm483_vm2, %v3306_v33  ;;  %v3589_v45 = vsel %vm845_vm3, %v876_v16, %v877_v23  ;;  %v882_v56 = vrot.slane %v3365_v54, 2  ;;  %v884_v38 = vrot.slane %v3396_v62, 2  ;;  %v2470_v62 = vld [vmem:[%s4129_s3 + $0x1c] sm:$0xf] }
  0x3c   : > { %v3600_v46 = vsel %vm845_vm3, %v877_v23, %v879_v32  ;;  %p3003_p10 = pnand %p3002_p9, %p2996_p5 }
  0x3d   : > { %2741 = vmatmul.mubr.msk.f32.gmra.mxu0 %vm483_vm2, %v3511_v24  ;;  %v3606_v6 = vsel %vm845_vm3, %v881_v51, %v882_v56  ;;  %v3615_v9 = vsel %vm845_vm3, %v882_v56, %v884_v38 }
  0x3e   : > { %2715 = vmatmul.mubr.msk.f32.gmra.mxu1 %vm483_vm2, %v3309_v34  ;;  %2743 = vmatprep.mubr.msk.f32.mxu0 %vm483_vm2, %v3535_v41 }
  0x3f   : > { %2717 = vmatprep.mubr.msk.f32.mxu1 %vm483_vm2, %v3347_v47 }
  0x41   : > { %2744 = vmatmul.mubr.msk.f32.gmra.mxu0 %vm483_vm2, %v3549_v63 }
  0x42   : > { %2718 = vmatmul.mubr.msk.f32.gmra.mxu1 %vm483_vm2, %v3350_v48  ;;  %2746 = vmatprep.mubr.msk.f32.mxu0 %vm483_vm2, %v3555_v2 }
  0x43   : > { %2720 = vmatprep.mubr.msk.f32.mxu1 %vm483_vm2, %v3231_v5 }
  0x45   : > { %2747 = vmatmul.mubr.msk.f32.gmra.mxu0 %vm483_vm2, %v3566_v13 }
  0x46   : > { %2721 = vmatmul.mubr.msk.f32.gmra.mxu1 %vm483_vm2, %v3236_v8  ;;  %2749 = vmatprep.mubr.msk.f32.mxu0 %vm483_vm2, %v3572_v15 }
  0x47   : > { %2723 = vmatprep.mubr.msk.f32.mxu1 %vm483_vm2, %v3263_v19 }
  0x49   : > { %2750 = vmatmul.mubr.msk.f32.gmra.mxu0 %vm483_vm2, %v3583_v27 }
  0x4a   : > { %2724 = vmatmul.mubr.msk.f32.gmra.mxu1 %vm483_vm2, %v3266_v20  ;;  %2752 = vmatprep.mubr.msk.f32.mxu0 %vm483_vm2, %v3589_v45 }
  0x4b   : > { %2726 = vmatprep.mubr.msk.f32.mxu1 %vm483_vm2, %v3312_v35 }
  0x4d   : > { %2753 = vmatmul.mubr.msk.f32.gmra.mxu0 %vm483_vm2, %v3600_v46 }
  0x4e   : > { %2727 = vmatmul.mubr.msk.f32.gmra.mxu1 %vm483_vm2, %v3323_v39  ;;  %2755 = vmatprep.mubr.msk.f32.mxu0 %vm483_vm2, %v3606_v6 }
  0x4f   : > { %2729 = vmatprep.mubr.msk.f32.mxu1 %vm483_vm2, %v3362_v53 }
  0x51   : > { %2756 = vmatmul.mubr.msk.f32.gmra.mxu0 %vm483_vm2, %v3615_v9 }
  0x52   : > { %2730 = vmatmul.mubr.msk.f32.gmra.mxu1 %vm483_vm2, %v3365_v54  ;;  %2786 = vmatprep.mubr.msk.f32.mxu0 %vm483_vm2, %v3318_v36  ;;  %v2488_v36 = vld [vmem:[%s4129_s3 + $0x20] sm:$0xf] }
  0x53   : > { %2760 = vmatprep.mubr.msk.f32.mxu1 %vm483_vm2, %v3248_v14 }
  0x55   : > { %2787 = vmatmul.mubr.msk.f32.vlgmr.msra.gmra.mxu0 %vm483_vm2, %v3337_v43 }
  0x56   : > { %2761 = vmatmul.mubr.msk.f32.vlgmr.msra.gmra.mxu1 %vm483_vm2, %v3259_v17  ;;  %2837 = vmatpush3.msk.msra.mxu0 %vm516_vm0, %v3482_v61 }
  0x57   : > { %2811 = vmatpush3.msk.msra.mxu1 %vm516_vm0, %v3458_v40  ;;  %2763 = vmatprep.mubr.msk.f32.mxu1 %vm483_vm2, %v3306_v33 }
  0x58   : > { %2789 = vmatprep.mubr.msk.f32.mxu0 %vm483_vm2, %v3356_v49  ;;  %2862 = vmatprep.subr.msk.mxu1 %vm516_vm0, %v2470_v62 }
  0x59   : > { %2790 = vmatmul.mubr.msk.f32.gmra.mxu0 %vm483_vm2, %v3392_v60  ;;  %2888 = vmatprep.subr.msk.mxu0 %vm516_vm0, %v2488_v36 }
  0x5a   : > { %2764 = vmatmul.mubr.msk.f32.gmra.mxu1 %vm483_vm2, %v3309_v34  ;;  %2792 = vmatprep.mubr.msk.f32.mxu0 %vm483_vm2, %v3405_v1 }
  0x5b   : > { %2766 = vmatprep.mubr.msk.f32.mxu1 %vm483_vm2, %v3347_v47 }
  0x5d   : > { %2793 = vmatmul.mubr.msk.f32.gmra.mxu0 %vm483_vm2, %v3421_v11 }
  0x5e   : > { %2767 = vmatmul.mubr.msk.f32.gmra.mxu1 %vm483_vm2, %v3350_v48  ;;  %2795 = vmatprep.mubr.msk.f32.mxu0 %vm483_vm2, %v3280_v22 }
  0x5f   : > { %2769 = vmatprep.mubr.msk.f32.mxu1 %vm483_vm2, %v3231_v5 }
  0x61   : > { %2796 = vmatmul.mubr.msk.f32.gmra.mxu0 %vm483_vm2, %v3300_v29 }
  0x62   : > { %2770 = vmatmul.mubr.msk.f32.gmra.mxu1 %vm483_vm2, %v3236_v8  ;;  %2798 = vmatprep.mubr.msk.f32.mxu0 %vm483_vm2, %v3334_v42 }
  0x63   : > { %2772 = vmatprep.mubr.msk.f32.mxu1 %vm483_vm2, %v3263_v19 }
  0x65   : > { %2799 = vmatmul.mubr.msk.f32.gmra.mxu0 %vm483_vm2, %v3340_v44 }
  0x66   : > { %2773 = vmatmul.mubr.msk.f32.gmra.mxu1 %vm483_vm2, %v3266_v20  ;;  %2801 = vmatprep.mubr.msk.f32.mxu0 %vm483_vm2, %v3376_v55 }
  0x67   : > { %2775 = vmatprep.mubr.msk.f32.mxu1 %vm483_vm2, %v3312_v35 }
  0x69   : > { %2802 = vmatmul.mubr.msk.f32.gmra.mxu0 %vm483_vm2, %v3402_v0 }
  0x6a   : > { %2776 = vmatmul.mubr.msk.f32.gmra.mxu1 %vm483_vm2, %v3323_v39  ;;  %2804 = vmatprep.mubr.msk.f32.mxu0 %vm483_vm2, %v3410_v7 }
  0x6b   : > { %2778 = vmatprep.mubr.msk.f32.mxu1 %vm483_vm2, %v3362_v53 }
  0x6d   : > { %2805 = vmatmul.mubr.msk.f32.gmra.mxu0 %vm483_vm2, %v3429_v12 }
  0x6e   : > { %2779 = vmatmul.mubr.msk.f32.gmra.mxu1 %vm483_vm2, %v3365_v54  ;;  %2807 = vmatprep.mubr.msk.f32.mxu0 %vm483_vm2, %v3491_v4 }
  0x6f   : > { %2781 = vmatprep.mubr.msk.f32.mxu1 %vm483_vm2, %v3436_v18 }
  0x71   : > { %2808 = vmatmul.mubr.msk.f32.gmra.mxu0 %vm483_vm2, %v3494_v28 }
  0x72   : > { %2782 = vmatmul.mubr.msk.f32.gmra.mxu1 %vm483_vm2, %v3445_v31  ;;  %2838 = vmatprep.mubr.msk.f32.mxu0 %vm483_vm2, %v3306_v33 }
  0x73   : > { %2812 = vmatprep.mubr.msk.f32.mxu1 %vm483_vm2, %v3463_v50 }
  0x75   : > { %2839 = vmatmul.mubr.msk.f32.vlgmr.msra.gmra.mxu0 %vm483_vm2, %v3309_v34 }
  0x76   : > { %2813 = vmatmul.mubr.msk.f32.vlgmr.msra.gmra.mxu1 %vm483_vm2, %v3474_v57  ;;  %2889 = vmatpush3.msk.msra.mxu0 %vm516_vm0, %v2488_v36 }
  0x77   : > { %2863 = vmatpush3.msk.msra.mxu1 %vm516_vm0, %v2470_v62  ;;  %2815 = vmatprep.mubr.msk.f32.mxu1 %vm483_vm2, %v3477_v58 }
  0x78   : > { %2841 = vmatprep.mubr.msk.f32.mxu0 %vm483_vm2, %v3347_v47 }
  0x79   : > { %2842 = vmatmul.mubr.msk.f32.gmra.mxu0 %vm483_vm2, %v3350_v48 }
  0x7a   : > { %2816 = vmatmul.mubr.msk.f32.gmra.mxu1 %vm483_vm2, %v3511_v24  ;;  %2844 = vmatprep.mubr.msk.f32.mxu0 %vm483_vm2, %v3231_v5 }
  0x7b   : > { %2818 = vmatprep.mubr.msk.f32.mxu1 %vm483_vm2, %v3535_v41 }
  0x7d   : > { %2845 = vmatmul.mubr.msk.f32.gmra.mxu0 %vm483_vm2, %v3236_v8 }
  0x7e   : > { %2819 = vmatmul.mubr.msk.f32.gmra.mxu1 %vm483_vm2, %v3549_v63  ;;  %2847 = vmatprep.mubr.msk.f32.mxu0 %vm483_vm2, %v3263_v19 }
  0x7f   : > { %2821 = vmatprep.mubr.msk.f32.mxu1 %vm483_vm2, %v3555_v2 }
  0x81   : > { %2848 = vmatmul.mubr.msk.f32.gmra.mxu0 %vm483_vm2, %v3266_v20 }
  0x82   : > { %2822 = vmatmul.mubr.msk.f32.gmra.mxu1 %vm483_vm2, %v3566_v13  ;;  %2850 = vmatprep.mubr.msk.f32.mxu0 %vm483_vm2, %v3312_v35 }
  0x83   : > { %2824 = vmatprep.mubr.msk.f32.mxu1 %vm483_vm2, %v3572_v15 }
  0x85   : > { %2851 = vmatmul.mubr.msk.f32.gmra.mxu0 %vm483_vm2, %v3323_v39 }
  0x86   : > { %2825 = vmatmul.mubr.msk.f32.gmra.mxu1 %vm483_vm2, %v3583_v27  ;;  %2853 = vmatprep.mubr.msk.f32.mxu0 %vm483_vm2, %v3362_v53 }
  0x87   : > { %2827 = vmatprep.mubr.msk.f32.mxu1 %vm483_vm2, %v3589_v45 }
  0x89   : > { %2854 = vmatmul.mubr.msk.f32.gmra.mxu0 %vm483_vm2, %v3365_v54 }
  0x8a   : > { %2828 = vmatmul.mubr.msk.f32.gmra.mxu1 %vm483_vm2, %v3600_v46  ;;  %2856 = vmatprep.mubr.msk.f32.mxu0 %vm483_vm2, %v3436_v18 }
  0x8b   : > { %2830 = vmatprep.mubr.msk.f32.mxu1 %vm483_vm2, %v3606_v6 }
  0x8d   : > { %2857 = vmatmul.mubr.msk.f32.gmra.mxu0 %vm483_vm2, %v3445_v31 }
  0x8e   : > { %2831 = vmatmul.mubr.msk.f32.gmra.mxu1 %vm483_vm2, %v3615_v9  ;;  %2859 = vmatprep.mubr.msk.f32.mxu0 %vm483_vm2, %v3467_v52 }
  0x8f   : > { %2833 = vmatprep.mubr.msk.f32.mxu1 %vm483_vm2, %v3504_v21 }
  0x91   : > { %2860 = vmatmul.mubr.msk.f32.gmra.mxu0 %vm483_vm2, %v3497_v10 }
  0x92   : > { %2834 = vmatmul.mubr.msk.f32.gmra.mxu1 %vm483_vm2, %v3516_v25  ;;  %2890 = vmatprep.mubr.msk.f32.mxu0 %vm483_vm2, %v3477_v58 }
  0x93   : > { %2864 = vmatprep.mubr.msk.f32.mxu1 %vm483_vm2, %v3356_v49 }
  0x95   : > { %2891 = vmatmul.mubr.msk.f32.vlgmr.msra.gmra.mxu0 %vm483_vm2, %v3511_v24 }
  0x96   : > { %2865 = vmatmul.mubr.msk.f32.vlgmr.msra.gmra.mxu1 %vm483_vm2, %v3392_v60  ;;  %2893 = vmatprep.mubr.msk.f32.mxu0 %vm483_vm2, %v3535_v41 }
  0x97   : > { %2867 = vmatprep.mubr.msk.f32.mxu1 %vm483_vm2, %v3405_v1 }
  0x99   : > { %2894 = vmatmul.mubr.msk.f32.gmra.mxu0 %vm483_vm2, %v3549_v63 }
  0x9a   : > { %2868 = vmatmul.mubr.msk.f32.gmra.mxu1 %vm483_vm2, %v3421_v11  ;;  %2896 = vmatprep.mubr.msk.f32.mxu0 %vm483_vm2, %v3555_v2 }
  0x9b   : > { %2870 = vmatprep.mubr.msk.f32.mxu1 %vm483_vm2, %v3280_v22 }
  0x9d   : > { %2897 = vmatmul.mubr.msk.f32.gmra.mxu0 %vm483_vm2, %v3566_v13 }
  0x9e   : > { %2871 = vmatmul.mubr.msk.f32.gmra.mxu1 %vm483_vm2, %v3300_v29  ;;  %2899 = vmatprep.mubr.msk.f32.mxu0 %vm483_vm2, %v3572_v15 }
  0x9f   : > { %2873 = vmatprep.mubr.msk.f32.mxu1 %vm483_vm2, %v3334_v42 }
  0xa1   : > { %2900 = vmatmul.mubr.msk.f32.gmra.mxu0 %vm483_vm2, %v3583_v27 }
  0xa2   : > { %2874 = vmatmul.mubr.msk.f32.gmra.mxu1 %vm483_vm2, %v3340_v44  ;;  %2902 = vmatprep.mubr.msk.f32.mxu0 %vm483_vm2, %v3589_v45 }
  0xa3   : > { %2876 = vmatprep.mubr.msk.f32.mxu1 %vm483_vm2, %v3376_v55 }
  0xa5   : > { %2903 = vmatmul.mubr.msk.f32.gmra.mxu0 %vm483_vm2, %v3600_v46 }
  0xa6   : > { %2877 = vmatmul.mubr.msk.f32.gmra.mxu1 %vm483_vm2, %v3402_v0  ;;  %2905 = vmatprep.mubr.msk.f32.mxu0 %vm483_vm2, %v3606_v6 }
  0xa7   : > { %2879 = vmatprep.mubr.msk.f32.mxu1 %vm483_vm2, %v3410_v7 }
  0xa9   : > { %2906 = vmatmul.mubr.msk.f32.gmra.mxu0 %vm483_vm2, %v3615_v9 }
  0xaa   : > { %2880 = vmatmul.mubr.msk.f32.gmra.mxu1 %vm483_vm2, %v3429_v12  ;;  %2908 = vmatprep.mubr.msk.f32.mxu0 %vm483_vm2, %v3504_v21 }
  0xab   : > { %2882 = vmatprep.mubr.msk.f32.mxu1 %vm483_vm2, %v3491_v4 }
  0xad   : > { %2909 = vmatmul.mubr.msk.f32.gmra.mxu0 %vm483_vm2, %v3516_v25 }
  0xae   : > { %2883 = vmatmul.mubr.msk.f32.gmra.mxu1 %vm483_vm2, %v3494_v28  ;;  %2911 = vmatprep.mubr.msk.f32.mxu0 %vm483_vm2, %v3527_v30 }
  0xaf   : > { %2885 = vmatprep.mubr.msk.f32.mxu1 %vm483_vm2, %v3524_v3 }
  0xb1   : > { %2912 = vmatmul.mubr.msk.f32.gmra.mxu0 %vm483_vm2, %v3540_v59 }
  0xb2   : > { %2886 = vmatmul.mubr.msk.f32.gmra.mxu1 %vm483_vm2, %v3530_v37 }
  0xe5   : > { %v2684_v5 = vpop.f32.mrf.mxu0 }
  0xe6   : > { %v2696_v8 = vpop.f32.mrf.mxu1 }
  0xe7   : > { %v586_v14 = vpop.f32.mrf.mxu0 }
  0xe8   : > { %v626_v17 = vpop.f32.mrf.mxu1 }
  0xe9   : > { %v2687_v19 = vpop.f32.mrf.mxu0 }
  0xea   : > { %v2699_v20 = vpop.f32.mrf.mxu1 }
  0xeb   : > { %v596_v22 = vpop.f32.mrf.mxu0 }
  0xec   : > { %v636_v29 = vpop.f32.mrf.mxu1 }
  0xed   : > { %v2690_v33 = vpop.f32.mrf.mxu0 }
  0xee   : > { %v2702_v34 = vpop.f32.mrf.mxu1 }
  0xef   : > { %v606_v35 = vpop.f32.mrf.mxu0 }
  0xf0   : > { %v646_v39 = vpop.f32.mrf.mxu1 }
  0xf1   : > { %v2693_v42 = vpop.f32.mrf.mxu0 }
  0xf2   : > { %v2705_v43 = vpop.f32.mrf.mxu1 }
  0xf3   : > { %v616_v44 = vpop.f32.mrf.mxu0 }
  0xf4   : > { %v3829_v47 = vpop.f32.mrf.mxu1 }
  0xf5   : > { %v2736_v48 = vpop.f32.mrf.mxu0 }
  0xf6   : > { %v2710_v49 = vpop.f32.mrf.mxu1 }
  0xf7   : > { %v772_v53 = vadd.f32 %v2710_v49, %v2684_v5  ;;  %v989_v54 = vpop.f32.mrf.mxu0 }
  0xf8   : > { %v766_v55 = vpop.f32.mrf.mxu1 }
  0xf9   : > { %v3831_v60 = vadd.f32 %v2736_v48, %v772_v53  ;;  %v767_v0 = vadd.f32 %v766_v55, %v586_v14  ;;  %v2739_v1 = vpop.f32.mrf.mxu0 }
  0xfa   : > { %v2713_v7 = vpop.f32.mrf.mxu1 }
  0xfb   : > { %v3833_v11 = vadd.f32 %v989_v54, %v767_v0  ;;  %v782_v12 = vadd.f32 %v2713_v7, %v2687_v19  ;;  %v999_v18 = vpop.f32.mrf.mxu0 }
  0xfc   : > { %v776_v31 = vpop.f32.mrf.mxu1 }
  0xfd   : > { %v3835_v40 = vadd.f32 %v2739_v1, %v782_v12  ;;  %v777_v50 = vadd.f32 %v776_v31, %v596_v22  ;;  %v2742_v52 = vpop.f32.mrf.mxu0 }
  0xfe   : > { %v2716_v57 = vpop.f32.mrf.mxu1 }
  0xff   : > { %v3837_v58 = vadd.f32 %v999_v18, %v777_v50  ;;  %v792_v61 = vadd.f32 %v2716_v57, %v2690_v33  ;;  %v1009_v4 = vpop.f32.mrf.mxu0 }
 0x100   : > { %v786_v28 = vpop.f32.mrf.mxu1 }
 0x101   : > { %v3839_v10 = vadd.f32 %v2742_v52, %v792_v61  ;;  %v787_v21 = vadd.f32 %v786_v28, %v606_v35  ;;  %v2745_v24 = vpop.f32.mrf.mxu0 }
 0x102   : > { %v2719_v25 = vpop.f32.mrf.mxu1 }
 0x103   : > { %v3841_v3 = vadd.f32 %v1009_v4, %v787_v21  ;;  %v802_v30 = vadd.f32 %v2719_v25, %v2693_v42  ;;  %v1019_v37 = vpop.f32.mrf.mxu0 }
 0x104   : > { %v796_v41 = vpop.f32.mrf.mxu1 }
 0x105   : > { %v3843_v59 = vadd.f32 %v2745_v24, %v802_v30  ;;  %v797_v63 = vadd.f32 %v796_v41, %v616_v44  ;;  %v2748_v2 = vpop.f32.mrf.mxu0 }
 0x106   : > { %v2722_v13 = vpop.f32.mrf.mxu1 }
 0x107   : > { %v3845_v26 = vadd.f32 %v1019_v37, %v797_v63  ;;  %v812_v15 = vadd.f32 %v2722_v13, %v2696_v8  ;;  %v1029_v16 = vpop.f32.mrf.mxu0 }
 0x108   : > { %v806_v23 = vpop.f32.mrf.mxu1 }
 0x109   : > { %v3847_v27 = vadd.f32 %v2748_v2, %v812_v15  ;;  %v807_v32 = vadd.f32 %v806_v23, %v626_v17  ;;  %v2751_v45 = vpop.f32.mrf.mxu0 }
 0x10a   : > { %v2725_v51 = vpop.f32.mrf.mxu1 }
 0x10b   : > { %v3849_v56 = vadd.f32 %v1029_v16, %v807_v32  ;;  %v822_v46 = vadd.f32 %v2725_v51, %v2699_v20  ;;  %v1039_v38 = vpop.f32.mrf.mxu0 }
 0x10c   : > { %v816_v6 = vpop.f32.mrf.mxu1 }
 0x10d   : > { %v3851_v9 = vadd.f32 %v2751_v45, %v822_v46  ;;  %v817_v62 = vadd.f32 %v816_v6, %v636_v29  ;;  %v2754_v36 = vpop.f32.mrf.mxu0 }
 0x10e   : > { %v2728_v5 = vpop.f32.mrf.mxu1 }
 0x10f   : > { %v3853_v14 = vadd.f32 %v1039_v38, %v817_v62  ;;  %v832_v8 = vadd.f32 %v2728_v5, %v2702_v34  ;;  %v1049_v19 = vpop.f32.mrf.mxu0 }
 0x110   : > { %v826_v22 = vpop.f32.mrf.mxu1 }
 0x111   : > { %v3855_v33 = vadd.f32 %v2754_v36, %v832_v8  ;;  %v827_v17 = vadd.f32 %v826_v22, %v646_v39  ;;  %v2757_v35 = vpop.f32.mrf.mxu0 }
 0x112   : > { %v2731_v42 = vpop.f32.mrf.mxu1 }
 0x113   : > { %v3857_v44 = vadd.f32 %v1049_v19, %v827_v17  ;;  %v842_v20 = vadd.f32 %v2731_v42, %v2705_v43  ;;  %v1059_v48 = vpop.f32.mrf.mxu0 }
 0x114   : > { %v836_v49 = vpop.f32.mrf.mxu1 }
 0x115   : > { %4135 = vst [vmem:[#allocation5_spill] sm:$0xff] %v3857_v44  ;;  %v3859_v53 = vadd.f32 %v2757_v35, %v842_v20  ;;  %v837_v29 = vadd.f32 %v836_v49, %v3829_v47  ;;  %v2788_v54 = vpop.f32.mrf.mxu0 }
 0x116   : > { %v2762_v55 = vpop.f32.mrf.mxu1 }
 0x117   : > { %4136 = vst [vmem:[#allocation6_spill] sm:$0xff] %v3859_v53  ;;  %v3862_v0 = vadd.f32 %v1059_v48, %v837_v29  ;;  %v1337_v34 = vpop.f32.mrf.mxu0  ;;  %v1241_v53 = vadd.f32 %v2762_v55, %v3831_v60 }
 0x118   : > { %v1161_v1 = vpop.f32.mrf.mxu1 }
 0x119   : > { %4137 = vst [vmem:[#allocation7_spill] sm:$0xff] %v3862_v0  ;;  %v3864_v7 = vpop.f32.mrf.mxu0  ;;  %v1240_v44 = vadd.f32 %v1161_v1, %v3833_v11 }
 0x11a   : > { %v2765_v39 = vpop.f32.mrf.mxu1 }
 0x11b   : > { %v3866_v12 = vpop.f32.mrf.mxu0 }
 0x11c   : > { %v1171_v18 = vpop.f32.mrf.mxu1 }
 0x11d   : > { %v3868_v31 = vpop.f32.mrf.mxu0  ;;  %v1242_v60 = vadd.f32 %v1171_v18, %v3837_v58 }
 0x11e   : > { %v2768_v43 = vpop.f32.mrf.mxu1 }
 0x11f   : > { %v3870_v50 = vpop.f32.mrf.mxu0  ;;  %v1245_v11 = vadd.f32 %v2768_v43, %v3839_v10 }
 0x120   : > { %v1181_v52 = vpop.f32.mrf.mxu1 }
 0x121   : > { %v3872_v57 = vpop.f32.mrf.mxu0 }
 0x122   : > { %v3874_v47 = vpop.f32.mrf.mxu1 }
 0x123   : > { %v3876_v61 = vpop.f32.mrf.mxu0  ;;  %v1247_v10 = vadd.f32 %v3874_v47, %v3843_v59 }
 0x124   : > { %v3878_v4 = vpop.f32.mrf.mxu1 }
 0x125   : > { %v3880_v28 = vpop.f32.mrf.mxu0 }
 0x126   : > { %v3882_v21 = vpop.f32.mrf.mxu1 }
 0x127   : > { %v3884_v24 = vpop.f32.mrf.mxu0 }
 0x128   : > { %v3886_v25 = vpop.f32.mrf.mxu1 }
 0x129   : > { %v3888_v30 = vpop.f32.mrf.mxu0 }
 0x12a   : > { %v3890_v37 = vpop.f32.mrf.mxu1 }
 0x12b   : > { %v3892_v41 = vpop.f32.mrf.mxu0 }
 0x12c   : > { %4138 = vst [vmem:[#allocation8_spill] sm:$0xff] %v3892_v41  ;;  %v3894_v63 = vpop.f32.mrf.mxu1 }
 0x12d   : > { %v3896_v2 = vpop.f32.mrf.mxu0 }
 0x12e   : > { %4139 = vst [vmem:[#allocation9_spill] sm:$0xff] %v3896_v2  ;;  %v3898_v13 = vpop.f32.mrf.mxu1 }
 0x12f   : > { %v3900_v15 = vpop.f32.mrf.mxu0 }
 0x130   : > { %4140 = vst [vmem:[#allocation10_spill] sm:$0xff] %v3900_v15  ;;  %v3902_v16 = vpop.f32.mrf.mxu1 }
 0x131   : > { %4141 = vst [vmem:[#allocation11_spill] sm:$0xff] %v3902_v16  ;;  %v3904_v23 = vpop.f32.mrf.mxu0 }
 0x132   : > { %4142 = vst [vmem:[#allocation12_spill] sm:$0xff] %v3904_v23  ;;  %v3906_v32 = vpop.f32.mrf.mxu1 }
 0x133   : > { %4143 = vst [vmem:[#allocation13_spill] sm:$0xff] %v3906_v32  ;;  %v3908_v45 = vpop.f32.mrf.mxu0 }
 0x134   : > { %4144 = vst [vmem:[#allocation14_spill] sm:$0xff] %v3908_v45  ;;  %v3910_v51 = vpop.f32.mrf.mxu1 }
 0x135   : > { %4145 = vst [vmem:[#allocation15_spill] sm:$0xff] %v3910_v51  ;;  %v2840_v46 = vpop.f32.mrf.mxu0 }
 0x136   : > { %v2814_v38 = vpop.f32.mrf.mxu1 }
 0x137   : > { %v1684_v6 = vpop.f32.mrf.mxu0 }
 0x138   : > { %v1512_v62 = vpop.f32.mrf.mxu1 }
 0x139   : > { %v2843_v36 = vpop.f32.mrf.mxu0 }
 0x13a   : > { %v2817_v5 = vpop.f32.mrf.mxu1 }
 0x13b   : > { %v3912_v8 = vpop.f32.mrf.mxu0 }
 0x13c   : > { %v1522_v19 = vpop.f32.mrf.mxu1 }
 0x13d   : > { %v3914_v22 = vpop.f32.mrf.mxu0 }
 0x13e   : > { %v2820_v17 = vpop.f32.mrf.mxu1 }
 0x13f   : > { %v3916_v35 = vpop.f32.mrf.mxu0 }
 0x140   : > { %v1532_v42 = vpop.f32.mrf.mxu1 }
 0x141   : > { %v3918_v20 = vpop.f32.mrf.mxu0 }
 0x142   : > { %v3920_v48 = vpop.f32.mrf.mxu1 }
 0x143   : > { %v3922_v49 = vpop.f32.mrf.mxu0 }
 0x144   : > { %4146 = vst [vmem:[#allocation16_spill] sm:$0xff] %v3922_v49  ;;  %v3924_v29 = vpop.f32.mrf.mxu1  ;;  %v1417_v49 = vadd.f32 %v2788_v54, %v1241_v53 }
 0x145   : > { %v3926_v45 = vpop.f32.mrf.mxu0 }
 0x146   : > { %4147 = vst [vmem:[#allocation17_spill] sm:$0xff] %v3926_v45  ;;  %v3928_v23 = vpop.f32.mrf.mxu1  ;;  %v1592_v55 = vadd.f32 %v2814_v38, %v1417_v49  ;;  %v1421_v38 = vadd.f32 %v3868_v31, %v1245_v11  ;;  %v1248_v11 = vadd.f32 %v3886_v25, %v3849_v56 }
 0x147   : > { %v3930_v51 = vpop.f32.mrf.mxu0 }
 0x148   : > { %4148 = vst [vmem:[#allocation18_spill] sm:$0xff] %v3930_v51  ;;  %v3932_v0 = vpop.f32.mrf.mxu1  ;;  %v1243_v51 = vadd.f32 %v2765_v39, %v3835_v40  ;;  %v1244_v40 = vadd.f32 %v1181_v52, %v3841_v3  ;;  %v1764_v58 = vadd.f32 %v2840_v46, %v1592_v55  ;;  %v1596_v52 = vadd.f32 %v2820_v17, %v1421_v38 }
 0x149   : > { %4149 = vst [vmem:[#allocation19_spill] sm:$0xff] %v3932_v0  ;;  %v3934_v15 = vpop.f32.mrf.mxu0 }
 0x14a   : > { %4150 = vst [vmem:[#allocation20_spill] sm:$0xff] %v3934_v15  ;;  %v3936_v32 = vpop.f32.mrf.mxu1  ;;  %v1420_v3 = vadd.f32 %v3870_v50, %v1244_v40  ;;  %v1249_v50 = vadd.f32 %v3882_v21, %v3847_v27 }
 0x14b   : > { %4151 = vst [vmem:[#allocation21_spill] sm:$0xff] %v3936_v32  ;;  %v3939_v2 = vpop.f32.mrf.mxu0  ;;  %v1416_v32 = vadd.f32 %v1337_v34, %v1240_v44  ;;  %v1418_v44 = vadd.f32 %v3866_v12, %v1242_v60  ;;  %v1246_v12 = vadd.f32 %v3878_v4, %v3845_v26 }
 0x14c   : > { %4152 = vst [vmem:[#allocation22_spill] sm:$0xff] %v3939_v2  ;;  %v3941_v16 = vpop.f32.mrf.mxu1 }
 0x14d   : > { %v3944_v41 = vpop.f32.mrf.mxu0  ;;  %v1591_v53 = vadd.f32 %v1512_v62, %v1416_v32  ;;  %v1593_v32 = vadd.f32 %v1522_v19, %v1418_v44  ;;  %v1595_v19 = vadd.f32 %v1532_v42, %v1420_v3 }
 0x14e   : > { %4153 = vst [vmem:[#allocation23_spill] sm:$0xff] %v3944_v41  ;;  %v3946_v45 = vpop.f32.mrf.mxu1  ;;  %v1419_v41 = vadd.f32 %v3864_v7, %v1243_v51 }
 0x14f   : > { %v3949_v0 = vpop.f32.mrf.mxu0  ;;  %v1763_v7 = vadd.f32 %v1684_v6, %v1591_v53  ;;  %v1765_v4 = vadd.f32 %v3912_v8, %v1593_v32  ;;  %v1768_v53 = vadd.f32 %v3914_v22, %v1596_v52 }
 0x150   : > { %v3951_v15 = vpop.f32.mrf.mxu1  ;;  %v1594_v34 = vadd.f32 %v2817_v5, %v1419_v41  ;;  %v3976_v41 = vld [vmem:[%s4130_s4] ss:$0 sm:$0xff]  ;;  %v1423_v5 = vadd.f32 %v3872_v57, %v1247_v10 }
 0x151   : > { %v3954_v2 = vpop.f32.mrf.mxu0 }
 0x152   : > { %v3957_v1 = vpop.f32.mrf.mxu1  ;;  %v1766_v46 = vadd.f32 %v2843_v36, %v1594_v34  ;;  %v1422_v36 = vadd.f32 %v3876_v61, %v1246_v12  ;;  %v1598_v57 = vadd.f32 %v3920_v48, %v1423_v5  ;;  %v1251_v34 = vadd.f32 %v3890_v37, %v3851_v9  ;;  %v4154_v12 = vld [vmem:[#allocation16_spill] sm:$0xff] }
 0x153   : > { %v3960_v54 = vpop.f32.mrf.mxu0  ;;  %v1767_v61 = vadd.f32 %v3916_v35, %v1595_v19  ;;  %v1250_v9 = vadd.f32 %v3894_v63, %v3853_v14  ;;  %v4155_v63 = vld [vmem:[#allocation19_spill] sm:$0xff] }
 0x154   : > { %v3963_v39 = vpop.f32.mrf.mxu1  ;;  %v1597_v56 = vadd.f32 %v3924_v29, %v1422_v36  ;;  %v1770_v37 = vadd.f32 %v3918_v20, %v1598_v57  ;;  %v1427_v3 = vadd.f32 %v3888_v30, %v1251_v34  ;;  %v4158_v30 = vld [vmem:[#allocation11_spill] sm:$0xff] }
 0x155   : > { %v2892_v18 = vpop.f32.mrf.mxu0 }
 0x156   : > { %v2866_v43 = vpop.f32.mrf.mxu1  ;;  %v1769_v14 = vadd.f32 %v4154_v12, %v1597_v56 }
 0x157   : > { %v1940_v51 = vadd.f32 %v2866_v43, %v1764_v58  ;;  %v2035_v62 = vpop.f32.mrf.mxu0  ;;  %v1425_v58 = vadd.f32 %v3880_v28, %v1249_v50  ;;  %v1424_v28 = vadd.f32 %v3884_v24, %v1248_v11  ;;  %v1253_v24 = vadd.f32 %v3898_v13, %v3855_v33  ;;  %v4157_v50 = vld [vmem:[#allocation5_spill] sm:$0xff] }
 0x158   : > { %v1860_v31 = vpop.f32.mrf.mxu1  ;;  %v1252_v19 = vadd.f32 %v4158_v30, %v4157_v50  ;;  %v4160_v13 = vld [vmem:[#allocation21_spill] sm:$0xff] }
 0x159   : > { %v2115_v59 = vadd.f32 %v2892_v18, %v1940_v51  ;;  %v1939_v47 = vadd.f32 %v1860_v31, %v1763_v7  ;;  %v2895_v6 = vpop.f32.mrf.mxu0  ;;  %v1600_v35 = vadd.f32 %v3928_v23, %v1425_v58  ;;  %v1599_v20 = vadd.f32 %v4155_v63, %v1424_v28 }
 0x15a   : > { %v2869_v26 = vpop.f32.mrf.mxu1 }
 0x15b   : > { %v2138_v17 = vadd.f32 %v3976_v41, %v2115_v59  ;;  %v2114_v49 = vadd.f32 %v2035_v62, %v1939_v47  ;;  %v1942_v60 = vadd.f32 %v2869_v26, %v1766_v46  ;;  %v2045_v55 = vpop.f32.mrf.mxu0  ;;  %v4159_v26 = vld [vmem:[#allocation17_spill] sm:$0xff] }
 0x15c   : > { %v1870_v40 = vpop.f32.mrf.mxu1  ;;  %v1772_v33 = vadd.f32 %v4159_v26, %v1600_v35 }
 0x15d   : > { %v2154_v27 = vmax.f32 %v2138_v17, 0.0  ;;  %v2137_v21 = vadd.f32 %v3976_v41, %v2114_v49  ;;  %v2117_v42 = vadd.f32 %v2895_v6, %v1942_v60  ;;  %v1941_v8 = vadd.f32 %v1870_v40, %v1765_v4  ;;  %v2898_v44 = vpop.f32.mrf.mxu0  ;;  %v4156_v6 = vld [vmem:[#allocation8_spill] sm:$0xff]  ;;  %v4162_v40 = vld [vmem:[#allocation6_spill] sm:$0xff] }
 0x15e   : > { %v2872_v25 = vpop.f32.mrf.mxu1  ;;  %v1426_v5 = vadd.f32 %v4156_v6, %v1250_v9  ;;  %v1602_v4 = vadd.f32 %v4160_v13, %v1427_v3  ;;  %v4168_v9 = vld [vmem:[#allocation20_spill] sm:$0xff] }
 0x15f   : > { %2170 = vst [vmem:[%s3996_s15 + $0x8] sm:$0xff] %v2154_v27  ;;  %v2153_v22 = vmax.f32 %v2137_v21, 0.0  ;;  %v2140_v48 = vadd.f32 %v3976_v41, %v2117_v42  ;;  %v2116_v18 = vadd.f32 %v2045_v55, %v1941_v8  ;;  %v1944_v38 = vadd.f32 %v2872_v25, %v1768_v53  ;;  %v2055_v10 = vpop.f32.mrf.mxu0  ;;  %v4161_v53 = vld [vmem:[#allocation9_spill] sm:$0xff]  ;;  %v4164_v42 = vld [vmem:[#allocation18_spill] sm:$0xff] }
 0x160   : > { %v1880_v29 = vpop.f32.mrf.mxu1  ;;  %v1429_v57 = vadd.f32 %v4161_v53, %v1253_v24  ;;  %v4163_v27 = vld [vmem:[#allocation13_spill] sm:$0xff]  ;;  %v1771_v8 = vadd.f32 %v4164_v42, %v1599_v20  ;;  %v4170_v24 = vld [vmem:[#allocation22_spill] sm:$0xff] }
 0x161   : > { %2169 = vst [vmem:[%s3996_s15] sm:$0xff] %v2153_v22  ;;  %v2156_v43 = vmax.f32 %v2140_v48, 0.0  ;;  %v2139_v7 = vadd.f32 %v3976_v41, %v2116_v18  ;;  %v2119_v32 = vadd.f32 %v2898_v44, %v1944_v38  ;;  %v1943_v51 = vadd.f32 %v1880_v29, %v1767_v61  ;;  %v2901_v62 = vpop.f32.mrf.mxu0  ;;  %v4165_v48 = vld [vmem:[#allocation10_spill] sm:$0xff]  ;;  %v4166_v38 = vld [vmem:[#allocation7_spill] sm:$0xff] }
 0x162   : > { %v2875_v52 = vpop.f32.mrf.mxu1  ;;  %v1255_v21 = vadd.f32 %v4163_v27, %v4162_v40  ;;  %v1601_v44 = vadd.f32 %v3941_v16, %v1426_v5  ;;  %v1428_v18 = vadd.f32 %v4165_v48, %v1252_v19  ;;  %v1604_v35 = vadd.f32 %v3946_v45, %v1429_v57 }
 0x163   : > { %2172 = vst [vmem:[%s3996_s15 + $0x18] sm:$0xff] %v2156_v43  ;;  %v2155_v23 = vmax.f32 %v2139_v7, 0.0  ;;  %v2142_v31 = vadd.f32 %v3976_v41, %v2119_v32  ;;  %v2118_v46 = vadd.f32 %v2055_v10, %v1943_v51  ;;  %v1946_v59 = vadd.f32 %v2875_v52, %v1770_v37  ;;  %v2065_v47 = vpop.f32.mrf.mxu0  ;;  %v4167_v10 = vld [vmem:[#allocation15_spill] sm:$0xff] }
 0x164   : > { %v1890_v17 = vpop.f32.mrf.mxu1  ;;  %v1254_v28 = vadd.f32 %v4167_v10, %v4166_v38  ;;  %v1774_v37 = vadd.f32 %v4168_v9, %v1602_v4  ;;  %v1773_v12 = vadd.f32 %v4170_v24, %v1601_v44 }
 0x165   : > { %2171 = vst [vmem:[%s3996_s15 + $0x10] sm:$0xff] %v2155_v23  ;;  %v2158_v49 = vmax.f32 %v2142_v31, 0.0  ;;  %v2141_v60 = vadd.f32 %v3976_v41, %v2118_v46  ;;  %v2121_v55 = vadd.f32 %v2901_v62, %v1946_v59  ;;  %v1945_v36 = vadd.f32 %v1890_v17, %v1769_v14  ;;  %v2904_v11 = vpop.f32.mrf.mxu0  ;;  %v4169_v62 = vld [vmem:[#allocation12_spill] sm:$0xff]  ;;  %v4171_v46 = vld [vmem:[#allocation14_spill] sm:$0xff] }
 0x166   : > { %v2878_v58 = vpop.f32.mrf.mxu1  ;;  %v1431_v3 = vadd.f32 %v4169_v62, %v1255_v21  ;;  %v1603_v14 = vadd.f32 %v3951_v15, %v1428_v18  ;;  %v1430_v59 = vadd.f32 %v4171_v46, %v1254_v28 }
 0x167   : > { %2174 = vst [vmem:[%s3996_s15 + $0x28] sm:$0xff] %v2158_v49  ;;  %v2157_v34 = vmax.f32 %v2141_v60, 0.0  ;;  %v2144_v61 = vadd.f32 %v3976_v41, %v2121_v55  ;;  %v2120_v56 = vadd.f32 %v2065_v47, %v1945_v36  ;;  %v1948_v25 = vadd.f32 %v2878_v58, %v1772_v33  ;;  %v2075_v22 = vpop.f32.mrf.mxu0  ;;  %v4172_v47 = vld [vmem:[#allocation23_spill] sm:$0xff] }
 0x168   : > { %v1900_v29 = vpop.f32.mrf.mxu1  ;;  %v1776_v6 = vadd.f32 %v4172_v47, %v1604_v35  ;;  %v1606_v5 = vadd.f32 %v3957_v1, %v1431_v3  ;;  %v1775_v13 = vadd.f32 %v3949_v0, %v1603_v14  ;;  %v1605_v4 = vadd.f32 %v3963_v39, %v1430_v59 }
 0x169   : > { %2173 = vst [vmem:[%s3996_s15 + $0x20] sm:$0xff] %v2157_v34  ;;  %v2160_v16 = vmax.f32 %v2144_v61, 0.0  ;;  %v2143_v43 = vadd.f32 %v3976_v41, %v2120_v56  ;;  %v2123_v7 = vadd.f32 %v2904_v11, %v1948_v25  ;;  %v1947_v32 = vadd.f32 %v1900_v29, %v1771_v8  ;;  %v2907_v51 = vpop.f32.mrf.mxu0 }
 0x16a   : > { %v2881_v63 = vpop.f32.mrf.mxu1  ;;  %v1778_v11 = vadd.f32 %v3954_v2, %v1606_v5  ;;  %v1777_v27 = vadd.f32 %v3960_v54, %v1605_v4 }
 0x16b   : > { %2176 = vst [vmem:[%s3996_s15 + $0x38] sm:$0xff] %v2160_v16  ;;  %v2159_v20 = vmax.f32 %v2143_v43, 0.0  ;;  %v2146_v45 = vadd.f32 %v3976_v41, %v2123_v7  ;;  %v2122_v52 = vadd.f32 %v2075_v22, %v1947_v32  ;;  %v1950_v23 = vadd.f32 %v2881_v63, %v1774_v37  ;;  %v2085_v31 = vpop.f32.mrf.mxu0 }
 0x16c   : > { %v1910_v50 = vpop.f32.mrf.mxu1 }
 0x16d   : > { %2175 = vst [vmem:[%s3996_s15 + $0x30] sm:$0xff] %v2159_v20  ;;  %v2162_v30 = vmax.f32 %v2146_v45, 0.0  ;;  %v2145_v15 = vadd.f32 %v3976_v41, %v2122_v52  ;;  %v2125_v19 = vadd.f32 %v2907_v51, %v1950_v23  ;;  %v1949_v26 = vadd.f32 %v1910_v50, %v1773_v12  ;;  %v2910_v33 = vpop.f32.mrf.mxu0 }
 0x16e   : > { %v2884_v17 = vpop.f32.mrf.mxu1 }
 0x16f   : > { %2178 = vst [vmem:[%s3996_s15 + $0x48] sm:$0xff] %v2162_v30  ;;  %v2161_v49 = vmax.f32 %v2145_v15, 0.0  ;;  %v2148_v1 = vadd.f32 %v3976_v41, %v2125_v19  ;;  %v2124_v60 = vadd.f32 %v2085_v31, %v1949_v26  ;;  %v1952_v55 = vadd.f32 %v2884_v17, %v1776_v6  ;;  %v2095_v36 = vpop.f32.mrf.mxu0 }
 0x170   : > { %v1920_v53 = vpop.f32.mrf.mxu1 }
 0x171   : > { %2177 = vst [vmem:[%s3996_s15 + $0x40] sm:$0xff] %v2161_v49  ;;  %v2164_v57 = vmax.f32 %v2148_v1, 0.0  ;;  %v2147_v0 = vadd.f32 %v3976_v41, %v2124_v60  ;;  %v2127_v40 = vadd.f32 %v2910_v33, %v1952_v55  ;;  %v1951_v39 = vadd.f32 %v1920_v53, %v1775_v13  ;;  %v2913_v42 = vpop.f32.mrf.mxu0 }
 0x172   : > { %v2887_v21 = vpop.f32.mrf.mxu1 }
 0x173   : > { %2180 = vst [vmem:[%s3996_s15 + $0x58] sm:$0xff] %v2164_v57  ;;  %v2163_v8 = vmax.f32 %v2147_v0, 0.0  ;;  %v2150_v44 = vadd.f32 %v3976_v41, %v2127_v40  ;;  %v2126_v2 = vadd.f32 %v2095_v36, %v1951_v39  ;;  %v1954_v58 = vadd.f32 %v2887_v21, %v1778_v11  ;;  %v2105_v22 = vpop.f32.mrf.mxu0 }
 0x174   : > { %v1930_v34 = vpop.f32.mrf.mxu1 }
 0x175   : > { %2179 = vst [vmem:[%s3996_s15 + $0x50] sm:$0xff] %v2163_v8  ;;  %v2166_v61 = vmax.f32 %v2150_v44, 0.0  ;;  %v2149_v56 = vadd.f32 %v3976_v41, %v2126_v2  ;;  %v2129_v25 = vadd.f32 %v2913_v42, %v1954_v58  ;;  %v1953_v54 = vadd.f32 %v1930_v34, %v1777_v27 }
 0x177   : > { %2182 = vst [vmem:[%s3996_s15 + $0x68] sm:$0xff] %v2166_v61  ;;  %v2165_v48 = vmax.f32 %v2149_v56, 0.0  ;;  %v2152_v18 = vadd.f32 %v3976_v41, %v2129_v25  ;;  %v2128_v38 = vadd.f32 %v2105_v22, %v1953_v54 }
 0x179   : > { %2181 = vst [vmem:[%s3996_s15 + $0x60] sm:$0xff] %v2165_v48  ;;  %v2168_v10 = vmax.f32 %v2152_v18, 0.0  ;;  %v2151_v28 = vadd.f32 %v3976_v41, %v2128_v38 }
 0x17b   : > { %2184 = vst [vmem:[%s3996_s15 + $0x78] sm:$0xff] %v2168_v10  ;;  %v2167_v9 = vmax.f32 %v2151_v28, 0.0 }
 0x17d   : > { %2183 = vst [vmem:[%s3996_s15 + $0x70] sm:$0xff] %v2167_v9 }
 0x17e   : > { %3006 = shalt.err (!%p3003_p10)
}
 0x17f   : > { %s3007_s8 = scalar_lea.hbm %s4067_s27, 2048  ;;  %s3011_s26 = scalar_lea.hbm %s4131_s5, 8192 }
 0x180   : > { %p3008_p11 = scmp.ne.s32.totalorder %s4067_s27, %s3007_s8  ;;  %p3012_p0 = scmp.lt.s32.totalorder %s4067_s27, %s4131_s5 }
 0x181   : > { %p3013_p1 = scmp.lt.s32.totalorder %s3011_s26, %s3007_s8 }
 0x182   : > { %p3009_p12 = pnand %p3008_p11, %p3171_p3 }
 0x183   : > { %p3014_p2 = por %p3013_p1, %p3012_p0 }
 0x184   : > { %p3010_p13 = pneg %p3009_p12 }
 0x186   : > { %p3015_p4 = pnand %p3014_p2, %p3010_p13 }
 0x188   : > { %3018 = shalt.err (!%p3015_p4)
}
 0x189   : > { %s3088_s14 = smov 128   ;;  %s3089_s9 = smov 8  }
 0x18a   : > { %2920 = dma.vmem_to_hbm [thread:$0]  (%p3171_p3), %s4069_s22, 2048, %s4067_s27, %s4075_s30, %s3088_s14, %s3088_s14, %s3089_s9  }
 0x18b PF: > { %p2926_p5 = scmp.ge.s32.totalorder %s3085_s25, 2  ;;  %s2217_s12 = sand.u32 1, %s3057_s18  }
 0x18c   : > { %s2218_s13 = scalar_lea.sflag [#allocation3], %s2217_s12 }
 0x18d   : > { %p2923_p6 = pnand %p2926_p5, %p3180_p8 }
 0x18f   : > { %p2924_p7 = pneg %p2923_p6 }
 0x191   : > { %3052 = dma.done.wait (%p2924_p7), %s2218_s13, 2048  }
 0x192   : > { %3054 = vsyncadd (%p2924_p7), %s2218_s13, 4294965248  ;;  %s18_s25 = sadd.s32 1, %s3085_s25   ;;  %s4173_s18 = smov %s3061_s19 }
 0x193   : > { %p15_p9 = scmp.ge.s32.totalorder %s18_s25, 6   ;;  %s4174_s19 = smov %s3065_s20 }
 0x194   : > { %s4175_s20 = smov %s3189_s11  ;;  %s4176_s21 = smov %s3077_s23 }
 0x195   : > { %s4177_s22 = smov %s3081_s24  ;;  %s4178_s23 = smov %s4181_s28 }
 0x196   : > { %s4179_s24 = smov %s4185_s29  ;;  %17 = sbr.rel (!%p15_p9) target bundleno = 5 (0x5), region = 89 }
 0x19b   :  { %2223 = vsyncpa [#allocation3], 1 }
 0x19c   :  { %2225 = vsyncpa [#allocation3 + $0x1], 1 }

</bundles_post_ra>
